<compile_context>
chip_gen: v5e
topology: v5e:2x2
jax: 0.10.0
libtpu: 0.0.40
codegen_flags: <defaults>
</compile_context>

<pallas_src>
import functools

import jax
import jax.numpy as jnp
from jax.experimental import pallas as pl
from jax.experimental.pallas import tpu as pltpu


# Explicit precision control (review item: do not inherit the global default).
_LIN_PREC = jax.lax.Precision.HIGHEST   # pair MLP + l0..l5 FxF linears
_MSG_PREC = jax.lax.Precision.DEFAULT   # one-hot gather/scatter (bf16 1-pass MXU)


# ----------------------------- kernel helpers ------------------------------
def _silu(x):
    return x * (1.0 / (1.0 + jnp.exp(-x)))


def _decompose_unique(T):
    """Unique irrep slabs of a list of 9 (rows, F) slabs (k = 3*row + col).

    Returns (i0, [a01, a02, a12], [s00, s01, s02, s11, s12, s22]).
    Full I/A/S are rebuilt by _recombine: 1 + 3 + 6 = 10 unique slabs.
    """
    i0 = (T[0] + T[4] + T[8]) * (1.0 / 3.0)
    a01 = 0.5 * (T[1] - T[3])
    a02 = 0.5 * (T[2] - T[6])
    a12 = 0.5 * (T[5] - T[7])
    s00 = T[0] - i0
    s11 = T[4] - i0
    s22 = T[8] - i0
    s01 = 0.5 * (T[1] + T[3])
    s02 = 0.5 * (T[2] + T[6])
    s12 = 0.5 * (T[5] + T[7])
    return i0, [a01, a02, a12], [s00, s01, s02, s11, s12, s22]


def _recombine(i0, a, s):
    """Rebuild the 9 spatial slabs (I + A + S) from the unique irrep slabs."""
    a01, a02, a12 = a
    s00, s01, s02, s11, s12, s22 = s
    return [i0 + s00, a01 + s01, a02 + s02,
            s01 - a01, i0 + s11, a12 + s12,
            s02 - a02, s12 - a12, i0 + s22]


def _slabs_from(buf, Fp):
    """Unique-slab lane slices of a (rows, 10*Fp) ref/array: i, a[3], s[6]."""
    i0 = buf[:, 0:Fp]
    a = [buf[:, (1 + j) * Fp:(2 + j) * Fp] for j in range(3)]
    s = [buf[:, (4 + j) * Fp:(5 + j) * Fp] for j in range(6)]
    return i0, a, s


# --------------------------- kernel 1: stage-1 ------------------------------
def _stage1_kernel(x_ref, l0_ref, l1_ref, l2_ref, g_ref):
    """Per atom tile: normalize X, decompose, stage-1 linears -> G slabs."""
    f32 = jnp.float32
    TN = x_ref.shape[1]
    Fp = x_ref.shape[2]

    X = [x_ref[k] for k in range(9)]
    norm = X[0] * X[0]
    for k in range(1, 9):
        norm = norm + X[k] * X[k]
    inv = 1.0 / (norm + 1.0)
    Xn = [x * inv for x in X]

    i0, a_u, s_u = _decompose_unique(Xn)
    iL = jnp.dot(i0, l0_ref[...], preferred_element_type=f32, precision=_LIN_PREC)
    aL = jnp.dot(jnp.concatenate(a_u, axis=0), l1_ref[...],
                 preferred_element_type=f32, precision=_LIN_PREC)
    sL = jnp.dot(jnp.concatenate(s_u, axis=0), l2_ref[...],
                 preferred_element_type=f32, precision=_LIN_PREC)

    # store lane-concatenated unique slabs directly (no concat of outputs)
    g_ref[:, 0:Fp] = iL
    for j in range(3):
        g_ref[:, (1 + j) * Fp:(2 + j) * Fp] = aL[j * TN:(j + 1) * TN, :]
    for j in range(6):
        g_ref[:, (4 + j) * Fp:(5 + j) * Fp] = sL[j * TN:(j + 1) * TN, :]


# --------------------- kernel 2: pair MLP + gather + weight ------------------
def _pair_kernel(rbf_ref, cut_ref, idx_send_ref, g_ref,
                 w1_ref, b1_ref, w2_ref, b2_ref, w3_ref, b3_ref,
                 msg_ref):
    """Per pair tile: rfv channels, gather sender slabs, channel weighting."""
    f32 = jnp.float32
    Np = g_ref.shape[0]
    Fp = g_ref.shape[1] // 10
    TP = rbf_ref.shape[0]

    h = _silu(jnp.dot(rbf_ref[...], w1_ref[...],
                      preferred_element_type=f32, precision=_LIN_PREC) + b1_ref[...])
    h = _silu(jnp.dot(h, w2_ref[...],
                      preferred_element_type=f32, precision=_LIN_PREC) + b2_ref[...])
    h = _silu(jnp.dot(h, w3_ref[...],
                      preferred_element_type=f32, precision=_LIN_PREC) + b3_ref[...])
    h = h * cut_ref[...]                                   # (TP, 3*Fp)
    rfv = [h[:, c * Fp:(c + 1) * Fp] for c in range(3)]    # 128-aligned lane slices

    # one-hot gather of sender rows of G (small-N*P fast path, DEFAULT precision)
    iota_pn = jax.lax.broadcasted_iota(jnp.int32, (TP, Np), 1)
    onehot_send = (iota_pn == idx_send_ref[...]).astype(f32)     # (TP, Np)
    gathered = jnp.dot(onehot_send, g_ref[...],
                       preferred_element_type=f32, precision=_MSG_PREC)

    # per-slab rfv channel weighting, stored slab-by-slab (Wp never materialized)
    msg_ref[:, 0:Fp] = gathered[:, 0:Fp] * rfv[0]
    for j in range(3):
        sl = slice((1 + j) * Fp, (2 + j) * Fp)
        msg_ref[:, sl] = gathered[:, sl] * rfv[1]
    for j in range(6):
        sl = slice((4 + j) * Fp, (5 + j) * Fp)
        msg_ref[:, sl] = gathered[:, sl] * rfv[2]


# --------------------- kernel 3: scatter + stage-2 update -------------------
def _stage2_kernel(group,
                   idx_recv_ref, msg_ref, x_ref, g_ref, q_ref,
                   l3_ref, l4_ref, l5_ref,
                   out_ref, acc_ref):
    f32 = jnp.float32
    TN = x_ref.shape[1]
    Fp = x_ref.shape[2]
    TP = msg_ref.shape[0]
    jp = pl.program_id(1)

    @pl.when(jp == 0)
    def _():
        acc_ref[...] = jnp.zeros_like(acc_ref)

    # scatter-add this pair chunk into the atom-tile accumulator:
    # onehot_pt[p, r] = (recv[p] == tile_base + r); contract the pair dim.
    base = pl.program_id(0) * TN
    cols = jax.lax.broadcasted_iota(jnp.int32, (TP, TN), 1) + base
    onehot_pt = (cols == idx_recv_ref[...]).astype(f32)          # (TP, TN)
    acc_ref[...] += jax.lax.dot_general(
        onehot_pt, msg_ref[...],
        dimension_numbers=(((0,), (0,)), ((), ())),
        preferred_element_type=f32, precision=_MSG_PREC)

    @pl.when(jp == pl.num_programs(1) - 1)
    def _():
        # recompute Xn (VPU-cheap) instead of round-tripping it through HBM
        X = [x_ref[k] for k in range(9)]
        norm = X[0] * X[0]
        for k in range(1, 9):
            norm = norm + X[k] * X[k]
        inv = 1.0 / (norm + 1.0)
        Xn = [x * inv for x in X]

        Y = _recombine(*_slabs_from(g_ref, Fp))
        M = _recombine(*_slabs_from(acc_ref, Fp))

        q_scale = pl.broadcast_to(1.0 + 0.1 * q_ref[...], (TN, Fp))   # hoisted

        # fused equivariance product: produce comb[k] directly (no MY/YM lists),
        # accumulate its Frobenius norm on the fly.
        comb = []
        normc = None
        for r in range(3):
            for c in range(3):
                if group == "O(3)":
                    t = (M[3 * r + 0] * Y[0 * 3 + c] + M[3 * r + 1] * Y[1 * 3 + c]
                         + M[3 * r + 2] * Y[2 * 3 + c]
                         + Y[3 * r + 0] * M[0 * 3 + c] + Y[3 * r + 1] * M[1 * 3 + c]
                         + Y[3 * r + 2] * M[2 * 3 + c])
                    t = q_scale * t
                else:  # "SO(3)"
                    t = 2.0 * (Y[3 * r + 0] * M[0 * 3 + c]
                               + Y[3 * r + 1] * M[1 * 3 + c]
                               + Y[3 * r + 2] * M[2 * 3 + c])
                comb.append(t)
                normc = t * t if normc is None else normc + t * t
        invn = 1.0 / (normc + 1.0)

        i0b, a_b, s_b = _decompose_unique(comb)
        i0b = i0b * invn
        a_b = [t * invn for t in a_b]
        s_b = [t * invn for t in s_b]

        iL2 = jnp.dot(i0b, l3_ref[...],
                      preferred_element_type=f32, precision=_LIN_PREC)
        aL2 = jnp.dot(jnp.concatenate(a_b, axis=0), l4_ref[...],
                      preferred_element_type=f32, precision=_LIN_PREC)
        sL2 = jnp.dot(jnp.concatenate(s_b, axis=0), l5_ref[...],
                      preferred_element_type=f32, precision=_LIN_PREC)
        dX = _recombine(iL2,
                        [aL2[j * TN:(j + 1) * TN, :] for j in range(3)],
                        [sL2[j * TN:(j + 1) * TN, :] for j in range(6)])

        # dX^2 computed inside the store loop (low liveness, interleaves stores)
        for r in range(3):
            for c in range(3):
                dx2 = (dX[3 * r + 0] * dX[0 * 3 + c]
                       + dX[3 * r + 1] * dX[1 * 3 + c]
                       + dX[3 * r + 2] * dX[2 * 3 + c])
                k = 3 * r + c
                out_ref[k] = Xn[k] + dX[k] + q_scale * dx2


# --------------------------- wrapper / padding -------------------------------
def _round_up(x, m):
    return (x + m - 1) // m * m


def _pad_right(a, shape):
    pads = [(0, s - d) for d, s in zip(a.shape, shape)]
    return jnp.pad(a, pads)


def _pad_params(params, F, Fp):
    """Zero-pad weights so the feature axis is Fp (multiple of 128) wide.

    Padded lanes carry exact zeros through the whole forward pass, so the
    result restricted to the first F features is unchanged.
    """
    R = params["w1"].shape[0]
    p = {}
    p["w1"] = _pad_right(params["w1"].astype(jnp.float32), (R, Fp))
    p["b1"] = _pad_right(params["b1"].astype(jnp.float32), (1, Fp))
    p["w2"] = _pad_right(params["w2"].astype(jnp.float32), (Fp, 2 * Fp))
    p["b2"] = _pad_right(params["b2"].astype(jnp.float32), (1, 2 * Fp))
    # torch does `.view(P, F, 3)` (feature-major, channel-minor).  Permute the
    # last-layer columns to channel-major, then pad each channel block to Fp so
    # the kernel takes 128-aligned (P, Fp) slices per channel.
    perm = (3 * jnp.arange(F)[None, :] + jnp.arange(3)[:, None]).reshape(-1)
    w3_cm = params["w3"][:, perm].reshape(2 * F, 3, F)
    b3_cm = params["b3"][:, perm].reshape(1, 3, F)
    p["w3"] = _pad_right(w3_cm.astype(jnp.float32), (2 * Fp, 3, Fp)).reshape(2 * Fp, 3 * Fp)
    p["b3"] = _pad_right(b3_cm.astype(jnp.float32), (1, 3, Fp)).reshape(1, 3 * Fp)
    for i in range(6):
        p[f"l{i}"] = _pad_right(params[f"l{i}"].astype(jnp.float32), (Fp, Fp))
    return p


def _vmem_limit_bytes():
    # ~3/4 of physical VMEM: ~48 MiB on v7x (64 MiB/TC), ~96 MiB on v5e/v6e.
    try:
        cap = pltpu.get_tpu_info().vmem_capacity_bytes
    except Exception:
        cap = 64 * 1024 * 1024
    return int(min(cap * 3 // 4, 112 * 1024 * 1024))


def tensornet_interaction(X, pair_indices, d_ij, radial_feature_vector,
                          atomic_charges, params, *, cutoff, group="O(3)",
                          atom_tile=None, pair_tile=None):
    N, F = X.shape[0], X.shape[1]
    P = pair_indices.shape[1]
    R = radial_feature_vector.shape[-1]
    Fp = _round_up(F, 128)                 # lane-dense feature width

    # tile sizes: atom tile multiple of 8 (>=256 for realistic N so the MXU M
    # dim fills on v6e/v7x), pair tile multiple of 8.
    if atom_tile is None:
        atom_tile = 256 if N >= 256 else _round_up(N, 8)
    if pair_tile is None:
        pair_tile = 512 if P >= 512 else _round_up(P, 8)
    TN, TP = atom_tile, pair_tile
    assert TN % 8 == 0 and TP % 8 == 0
    Np = _round_up(N, TN)
    Pp = _round_up(P, TP)
    nat = Np // TN
    npt = Pp // TP

    # ---- host-side padding (padded atoms/pairs contribute exact zeros) ------
    X9 = jnp.transpose(X.reshape(N, F, 9), (2, 0, 1)).astype(jnp.float32)
    X9 = _pad_right(X9, (9, Np, Fp))
    idx_recv = _pad_right(pair_indices[0].reshape(P, 1).astype(jnp.int32), (Pp, 1))
    idx_send = _pad_right(pair_indices[1].reshape(P, 1).astype(jnp.int32), (Pp, 1))
    d = d_ij.reshape(P, 1).astype(jnp.float32)
    # CosineAttenuationFunction (plain-JAX glue; keeps the cos out of the kernel)
    C = 0.5 * (jnp.cos(jnp.pi * d / cutoff) + 1.0) * (d < cutoff).astype(jnp.float32)
    C = _pad_right(C, (Pp, 1))             # padded pairs -> zero messages
    rbf = _pad_right(radial_feature_vector.reshape(P, R).astype(jnp.float32), (Pp, R))
    q = _pad_right(atomic_charges.reshape(N, 1).astype(jnp.float32), (Np, 1))
    pp = _pad_params(params, F, Fp)

    vmem_limit = _vmem_limit_bytes()

    # ---- kernel 1: stage-1 (atom-tiled, parallel) ----------------------------
    G = pl.pallas_call(
        _stage1_kernel,
        out_shape=jax.ShapeDtypeStruct((Np, 10 * Fp), jnp.float32),
        grid=(nat,),
        in_specs=[
            pl.BlockSpec((9, TN, Fp), lambda i: (0, i, 0)),
            pl.BlockSpec((Fp, Fp), lambda i: (0, 0)),
            pl.BlockSpec((Fp, Fp), lambda i: (0, 0)),
            pl.BlockSpec((Fp, Fp), lambda i: (0, 0)),
        ],
        out_specs=pl.BlockSpec((TN, 10 * Fp), lambda i: (i, 0)),
        compiler_params=pltpu.CompilerParams(
            dimension_semantics=("parallel",),
            vmem_limit_bytes=vmem_limit),
    )(X9, pp["l0"], pp["l1"], pp["l2"])

    # ---- kernel 2: pair MLP + gather + weighting (pair-tiled, parallel) ------
    msg = pl.pallas_call(
        _pair_kernel,
        out_shape=jax.ShapeDtypeStruct((Pp, 10 * Fp), jnp.float32),
        grid=(npt,),
        in_specs=[
            pl.BlockSpec((TP, R), lambda j: (j, 0)),
            pl.BlockSpec((TP, 1), lambda j: (j, 0)),
            pl.BlockSpec((TP, 1), lambda j: (j, 0)),
            pl.BlockSpec((Np, 10 * Fp), lambda j: (0, 0)),   # full G resident
            pl.BlockSpec((R, Fp), lambda j: (0, 0)),
            pl.BlockSpec((1, Fp), lambda j: (0, 0)),
            pl.BlockSpec((Fp, 2 * Fp), lambda j: (0, 0)),
            pl.BlockSpec((1, 2 * Fp), lambda j: (0, 0)),
            pl.BlockSpec((2 * Fp, 3 * Fp), lambda j: (0, 0)),
            pl.BlockSpec((1, 3 * Fp), lambda j: (0, 0)),
        ],
        out_specs=pl.BlockSpec((TP, 10 * Fp), lambda j: (j, 0)),
        compiler_params=pltpu.CompilerParams(
            dimension_semantics=("parallel",),
            vmem_limit_bytes=vmem_limit),
    )(rbf, C, idx_send, G, pp["w1"], pp["b1"], pp["w2"], pp["b2"], pp["w3"], pp["b3"])

    # ---- kernel 3: scatter + stage-2 (atom parallel x pair arbitrary) --------
    out9 = pl.pallas_call(
        functools.partial(_stage2_kernel, group),
        out_shape=jax.ShapeDtypeStruct((9, Np, Fp), jnp.float32),
        grid=(nat, npt),
        in_specs=[
            pl.BlockSpec((TP, 1), lambda i, j: (j, 0)),          # idx_recv
            pl.BlockSpec((TP, 10 * Fp), lambda i, j: (j, 0)),    # msg chunk
            pl.BlockSpec((9, TN, Fp), lambda i, j: (0, i, 0)),   # X tile
            pl.BlockSpec((TN, 10 * Fp), lambda i, j: (i, 0)),    # G tile (for Y)
            pl.BlockSpec((TN, 1), lambda i, j: (i, 0)),          # q tile
            pl.BlockSpec((Fp, Fp), lambda i, j: (0, 0)),
            pl.BlockSpec((Fp, Fp), lambda i, j: (0, 0)),
            pl.BlockSpec((Fp, Fp), lambda i, j: (0, 0)),
        ],
        out_specs=pl.BlockSpec((9, TN, Fp), lambda i, j: (0, i, 0)),
        scratch_shapes=[pltpu.VMEM((TN, 10 * Fp), jnp.float32)],
        compiler_params=pltpu.CompilerParams(
            dimension_semantics=("parallel", "arbitrary"),
            vmem_limit_bytes=vmem_limit),
    )(idx_recv, msg, X9, G, q, pp["l3"], pp["l4"], pp["l5"])

    out9 = out9[:, :N, :F]
    return jnp.transpose(out9, (1, 2, 0)).reshape(N, F, 3, 3)


# ------------------------ deterministic parameter init ----------------------
def init_params(key, F, R):
    ks = jax.random.split(key, 12)

    def u(k, shape, fan_in):
        bound = 1.0 / jnp.sqrt(jnp.float32(fan_in))
        return jax.random.uniform(k, shape, jnp.float32, -bound, bound)

    # mlp_scalar: Dense(R->F), Dense(F->2F), Dense(2F->3F); weights kept in
    # (in, out) layout so kernel/reference compute y = x @ W + b.
    params = dict(
        w1=u(ks[0], (R, F), R),             b1=u(ks[1], (1, F), R),
        w2=u(ks[2], (F, 2 * F), F),         b2=u(ks[3], (1, 2 * F), F),
        w3=u(ks[4], (2 * F, 3 * F), 2 * F), b3=u(ks[5], (1, 3 * F), 2 * F),
    )
    # 6 bias-free Dense(F->F) layers, stored as (in, out) i.e. torch weight.T
    for i in range(6):
        params[f"l{i}"] = u(ks[6 + i], (F, F), F)
    return params


# --------------------------- pure-JAX reference ------------------------------
def reference_forward(X, pair_indices, d_ij, rbf, q, params, *, cutoff, group="O(3)"):
    N, F = X.shape[0], X.shape[1]
    d = d_ij.reshape(-1, 1)
    C = 0.5 * (jnp.cos(jnp.pi * d / cutoff) + 1.0) * (d < cutoff)
    silu = lambda x: x * jax.nn.sigmoid(x)
    h = silu(rbf @ params["w1"] + params["b1"])
    h = silu(h @ params["w2"] + params["b2"])
    h = silu(h @ params["w3"] + params["b3"])
    rfv = (h * C).reshape(-1, F, 3)

    def tnorm(T):
        return (T ** 2).sum((-2, -1))

    def decomp(T):
        dm = jnp.trace(T, axis1=-2, axis2=-1) / 3.0
        I = dm[..., None, None] * jnp.eye(3, dtype=T.dtype)
        A = 0.5 * (T - jnp.swapaxes(T, -1, -2))
        S = 0.5 * (T + jnp.swapaxes(T, -1, -2)) - I
        return I, A, S

    def lin(T, W):
        return jnp.einsum("nfab,fg->ngab", T, W)

    def mp(T, rc):
        msg = rc[:, :, None, None] * T[pair_indices[1]]
        return jax.ops.segment_sum(msg, pair_indices[0], num_segments=N)

    Xn = X / (tnorm(X) + 1.0)[..., None, None]
    I, A, S = decomp(Xn)
    I = lin(I, params["l0"]); A = lin(A, params["l1"]); S = lin(S, params["l2"])
    Y = I + A + S
    M = mp(I, rfv[..., 0]) + mp(A, rfv[..., 1]) + mp(S, rfv[..., 2])
    qs = (1.0 + 0.1 * q)[:, None, None, None]
    if group == "O(3)":
        I, A, S = decomp(qs * (jnp.matmul(M, Y) + jnp.matmul(Y, M)))
    else:
        I, A, S = decomp(2.0 * jnp.matmul(Y, M))
    normp1 = (tnorm(I + A + S) + 1.0)[..., None, None]
    I, A, S = I / normp1, A / normp1, S / normp1
    I = lin(I, params["l3"]); A = lin(A, params["l4"]); S = lin(S, params["l5"])
    dX = I + A + S
    return Xn + dX + qs * jnp.matmul(dX, dX)


# ----------------------------------- main ------------------------------------
if __name__ == "__main__":
    # Small shapes, but chosen so the grid actually exercises multiple atom
    # tiles (nat=3) and multiple pair chunks incl. padded pairs (npt=3, 40->48).
    N, F, R, P = 24, 32, 16, 40
    cutoff = 0.5                          # nm

    key = jax.random.PRNGKey(0)
    k_x, k_pi, k_d, k_r, k_q, k_p = jax.random.split(key, 6)
    X = jax.random.normal(k_x, (N, F, 3, 3), jnp.float32) * 0.5
    pair_indices = jax.random.randint(k_pi, (2, P), 0, N, jnp.int32)
    d_ij = jax.random.uniform(k_d, (P, 1), jnp.float32, 0.05, 0.45)
    radial_feature_vector = jax.random.normal(k_r, (P, R), jnp.float32) * 0.5
    atomic_charges = jax.random.normal(k_q, (N,), jnp.float32)
    params = init_params(k_p, F, R)

    out = tensornet_interaction(X, pair_indices, d_ij, radial_feature_vector,
                                atomic_charges, params, cutoff=cutoff,
                                group="O(3)", atom_tile=8, pair_tile=16)
    out = jax.block_until_ready(out)

    with jax.default_matmul_precision("highest"):
        ref = reference_forward(X, pair_indices, d_ij, radial_feature_vector,
                                atomic_charges, params, cutoff=cutoff, group="O(3)")
        ref = jax.block_until_ready(ref)

    err = float(jnp.max(jnp.abs(out - ref)))
    assert out.shape == (N, F, 3, 3)
    assert err < 5e-3, f"max abs err {err}"
    print("KERNEL_OK")
</pallas_src>

<mosaic_0001>
module attributes {stable_mosaic.version = 11 : i64} {
  func.func @_stage1_kernel(%arg0: i32, %arg1: memref<9x8x128xf32, #tpu.memory_space<vmem>>, %arg2: memref<128x128xf32, #tpu.memory_space<vmem>>, %arg3: memref<128x128xf32, #tpu.memory_space<vmem>>, %arg4: memref<128x128xf32, #tpu.memory_space<vmem>>, %arg5: memref<8x1280xf32, #tpu.memory_space<vmem>>) attributes {dimension_semantics = [#tpu.dimension_semantics<parallel>], iteration_bounds = array<i64: 3>, scalar_prefetch = 0 : i64, scratch_operands = 0 : i64, tpu.core_type = #tpu.core_type<tc>, window_params = [{transform_indices = @transform_0, window_bounds = array<i64: 9, 8, 128>}, {pipeline_mode = #tpu.pipeline_mode<synchronous>, transform_indices = @transform_1, window_bounds = array<i64: 128, 128>}, {pipeline_mode = #tpu.pipeline_mode<synchronous>, transform_indices = @transform_2, window_bounds = array<i64: 128, 128>}, {pipeline_mode = #tpu.pipeline_mode<synchronous>, transform_indices = @transform_3, window_bounds = array<i64: 128, 128>}, {transform_indices = @transform_4, window_bounds = array<i64: 8, 1280>}]} {
    %c0 = arith.constant 0 : index
    %c0_0 = arith.constant 0 : index
    %c0_1 = arith.constant 0 : index
    %0 = vector.load %arg1[%c0, %c0_0, %c0_1] : memref<9x8x128xf32, #tpu.memory_space<vmem>>, vector<1x8x128xf32>
    %1 = vector.shape_cast %0 : vector<1x8x128xf32> to vector<8x128xf32>
    %c1 = arith.constant 1 : index
    %c0_2 = arith.constant 0 : index
    %c0_3 = arith.constant 0 : index
    %2 = vector.load %arg1[%c1, %c0_2, %c0_3] : memref<9x8x128xf32, #tpu.memory_space<vmem>>, vector<1x8x128xf32>
    %3 = vector.shape_cast %2 : vector<1x8x128xf32> to vector<8x128xf32>
    %c2 = arith.constant 2 : index
    %c0_4 = arith.constant 0 : index
    %c0_5 = arith.constant 0 : index
    %4 = vector.load %arg1[%c2, %c0_4, %c0_5] : memref<9x8x128xf32, #tpu.memory_space<vmem>>, vector<1x8x128xf32>
    %5 = vector.shape_cast %4 : vector<1x8x128xf32> to vector<8x128xf32>
    %c3 = arith.constant 3 : index
    %c0_6 = arith.constant 0 : index
    %c0_7 = arith.constant 0 : index
    %6 = vector.load %arg1[%c3, %c0_6, %c0_7] : memref<9x8x128xf32, #tpu.memory_space<vmem>>, vector<1x8x128xf32>
    %7 = vector.shape_cast %6 : vector<1x8x128xf32> to vector<8x128xf32>
    %c4 = arith.constant 4 : index
    %c0_8 = arith.constant 0 : index
    %c0_9 = arith.constant 0 : index
    %8 = vector.load %arg1[%c4, %c0_8, %c0_9] : memref<9x8x128xf32, #tpu.memory_space<vmem>>, vector<1x8x128xf32>
    %9 = vector.shape_cast %8 : vector<1x8x128xf32> to vector<8x128xf32>
    %c5 = arith.constant 5 : index
    %c0_10 = arith.constant 0 : index
    %c0_11 = arith.constant 0 : index
    %10 = vector.load %arg1[%c5, %c0_10, %c0_11] : memref<9x8x128xf32, #tpu.memory_space<vmem>>, vector<1x8x128xf32>
    %11 = vector.shape_cast %10 : vector<1x8x128xf32> to vector<8x128xf32>
    %c6 = arith.constant 6 : index
    %c0_12 = arith.constant 0 : index
    %c0_13 = arith.constant 0 : index
    %12 = vector.load %arg1[%c6, %c0_12, %c0_13] : memref<9x8x128xf32, #tpu.memory_space<vmem>>, vector<1x8x128xf32>
    %13 = vector.shape_cast %12 : vector<1x8x128xf32> to vector<8x128xf32>
    %c7 = arith.constant 7 : index
    %c0_14 = arith.constant 0 : index
    %c0_15 = arith.constant 0 : index
    %14 = vector.load %arg1[%c7, %c0_14, %c0_15] : memref<9x8x128xf32, #tpu.memory_space<vmem>>, vector<1x8x128xf32>
    %15 = vector.shape_cast %14 : vector<1x8x128xf32> to vector<8x128xf32>
    %c8 = arith.constant 8 : index
    %c0_16 = arith.constant 0 : index
    %c0_17 = arith.constant 0 : index
    %16 = vector.load %arg1[%c8, %c0_16, %c0_17] : memref<9x8x128xf32, #tpu.memory_space<vmem>>, vector<1x8x128xf32>
    %17 = vector.shape_cast %16 : vector<1x8x128xf32> to vector<8x128xf32>
    %18 = arith.mulf %1, %1 : vector<8x128xf32>
    %19 = arith.mulf %3, %3 : vector<8x128xf32>
    %20 = arith.addf %18, %19 : vector<8x128xf32>
    %21 = arith.mulf %5, %5 : vector<8x128xf32>
    %22 = arith.addf %20, %21 : vector<8x128xf32>
    %23 = arith.mulf %7, %7 : vector<8x128xf32>
    %24 = arith.addf %22, %23 : vector<8x128xf32>
    %25 = arith.mulf %9, %9 : vector<8x128xf32>
    %26 = arith.addf %24, %25 : vector<8x128xf32>
    %27 = arith.mulf %11, %11 : vector<8x128xf32>
    %28 = arith.addf %26, %27 : vector<8x128xf32>
    %29 = arith.mulf %13, %13 : vector<8x128xf32>
    %30 = arith.addf %28, %29 : vector<8x128xf32>
    %31 = arith.mulf %15, %15 : vector<8x128xf32>
    %32 = arith.addf %30, %31 : vector<8x128xf32>
    %33 = arith.mulf %17, %17 : vector<8x128xf32>
    %34 = arith.addf %32, %33 : vector<8x128xf32>
    %cst = arith.constant 1.000000e+00 : f32
    %35 = vector.broadcast %cst : f32 to vector<8x128xf32>
    %36 = arith.addf %34, %35 : vector<8x128xf32>
    %cst_18 = arith.constant 1.000000e+00 : f32
    %37 = vector.broadcast %cst_18 : f32 to vector<8x128xf32>
    %38 = arith.divf %37, %36 : vector<8x128xf32>
    %39 = arith.mulf %1, %38 : vector<8x128xf32>
    %40 = arith.mulf %3, %38 : vector<8x128xf32>
    %41 = arith.mulf %5, %38 : vector<8x128xf32>
    %42 = arith.mulf %7, %38 : vector<8x128xf32>
    %43 = arith.mulf %9, %38 : vector<8x128xf32>
    %44 = arith.mulf %11, %38 : vector<8x128xf32>
    %45 = arith.mulf %13, %38 : vector<8x128xf32>
    %46 = arith.mulf %15, %38 : vector<8x128xf32>
    %47 = arith.mulf %17, %38 : vector<8x128xf32>
    %48 = arith.addf %39, %43 : vector<8x128xf32>
    %49 = arith.addf %48, %47 : vector<8x128xf32>
    %cst_19 = arith.constant 0.333333343 : f32
    %50 = vector.broadcast %cst_19 : f32 to vector<8x128xf32>
    %51 = arith.mulf %49, %50 : vector<8x128xf32>
    %52 = arith.subf %40, %42 : vector<8x128xf32>
    %cst_20 = arith.constant 5.000000e-01 : f32
    %53 = vector.broadcast %cst_20 : f32 to vector<8x128xf32>
    %54 = arith.mulf %53, %52 : vector<8x128xf32>
    %55 = arith.subf %41, %45 : vector<8x128xf32>
    %cst_21 = arith.constant 5.000000e-01 : f32
    %56 = vector.broadcast %cst_21 : f32 to vector<8x128xf32>
    %57 = arith.mulf %56, %55 : vector<8x128xf32>
    %58 = arith.subf %44, %46 : vector<8x128xf32>
    %cst_22 = arith.constant 5.000000e-01 : f32
    %59 = vector.broadcast %cst_22 : f32 to vector<8x128xf32>
    %60 = arith.mulf %59, %58 : vector<8x128xf32>
    %61 = arith.subf %39, %51 : vector<8x128xf32>
    %62 = arith.subf %43, %51 : vector<8x128xf32>
    %63 = arith.subf %47, %51 : vector<8x128xf32>
    %64 = arith.addf %40, %42 : vector<8x128xf32>
    %cst_23 = arith.constant 5.000000e-01 : f32
    %65 = vector.broadcast %cst_23 : f32 to vector<8x128xf32>
    %66 = arith.mulf %65, %64 : vector<8x128xf32>
    %67 = arith.addf %41, %45 : vector<8x128xf32>
    %cst_24 = arith.constant 5.000000e-01 : f32
    %68 = vector.broadcast %cst_24 : f32 to vector<8x128xf32>
    %69 = arith.mulf %68, %67 : vector<8x128xf32>
    %70 = arith.addf %44, %46 : vector<8x128xf32>
    %cst_25 = arith.constant 5.000000e-01 : f32
    %71 = vector.broadcast %cst_25 : f32 to vector<8x128xf32>
    %72 = arith.mulf %71, %70 : vector<8x128xf32>
    %c0_26 = arith.constant 0 : index
    %c0_27 = arith.constant 0 : index
    %73 = vector.load %arg2[%c0_26, %c0_27] : memref<128x128xf32, #tpu.memory_space<vmem>>, vector<128x128xf32>
    %cst_28 = arith.constant dense<0.000000e+00> : vector<8x128xf32>
    %74 = tpu.matmul %51, %73, %cst_28 {dimension_numbers = #tpu.dot_dimension_numbers<[1], [0], [0], [1], [0, 0, 1, 1], [], []>, precision = #tpu.contract_precision<fp32>} : vector<8x128xf32>, vector<128x128xf32>, vector<8x128xf32> -> vector<8x128xf32>
    %75 = tpu.concatenate %54, %57, %60 in 0 : vector<8x128xf32>, vector<8x128xf32>, vector<8x128xf32> -> vector<24x128xf32>
    %c0_29 = arith.constant 0 : index
    %c0_30 = arith.constant 0 : index
    %76 = vector.load %arg3[%c0_29, %c0_30] : memref<128x128xf32, #tpu.memory_space<vmem>>, vector<128x128xf32>
    %cst_31 = arith.constant dense<0.000000e+00> : vector<24x128xf32>
    %77 = tpu.matmul %75, %76, %cst_31 {dimension_numbers = #tpu.dot_dimension_numbers<[1], [0], [0], [1], [0, 0, 1, 1], [], []>, precision = #tpu.contract_precision<fp32>} : vector<24x128xf32>, vector<128x128xf32>, vector<24x128xf32> -> vector<24x128xf32>
    %78 = tpu.concatenate %61, %66, %69, %62, %72, %63 in 0 : vector<8x128xf32>, vector<8x128xf32>, vector<8x128xf32>, vector<8x128xf32>, vector<8x128xf32>, vector<8x128xf32> -> vector<48x128xf32>
    %c0_32 = arith.constant 0 : index
    %c0_33 = arith.constant 0 : index
    %79 = vector.load %arg4[%c0_32, %c0_33] : memref<128x128xf32, #tpu.memory_space<vmem>>, vector<128x128xf32>
    %cst_34 = arith.constant dense<0.000000e+00> : vector<48x128xf32>
    %80 = tpu.matmul %78, %79, %cst_34 {dimension_numbers = #tpu.dot_dimension_numbers<[1], [0], [0], [1], [0, 0, 1, 1], [], []>, precision = #tpu.contract_precision<fp32>} : vector<48x128xf32>, vector<128x128xf32>, vector<48x128xf32> -> vector<48x128xf32>
    %c0_35 = arith.constant 0 : index
    %c0_36 = arith.constant 0 : index
    %81 = vector.load %arg5[%c0_35, %c0_36] : memref<8x1280xf32, #tpu.memory_space<vmem>>, vector<8x128xf32>
    tpu.vector_store %arg5[%c0_35, %c0_36], %74 {strides = array<i32>} : memref<8x1280xf32, #tpu.memory_space<vmem>>, vector<8x128xf32>,
    %82 = vector.extract_strided_slice %77 {offsets = [0, 0], sizes = [8, 128], strides = [1, 1]} : vector<24x128xf32> to vector<8x128xf32>
    %c0_37 = arith.constant 0 : index
    %c128 = arith.constant 128 : index
    %83 = vector.load %arg5[%c0_37, %c128] : memref<8x1280xf32, #tpu.memory_space<vmem>>, vector<8x128xf32>
    tpu.vector_store %arg5[%c0_37, %c128], %82 {strides = array<i32>} : memref<8x1280xf32, #tpu.memory_space<vmem>>, vector<8x128xf32>,
    %84 = vector.extract_strided_slice %77 {offsets = [8, 0], sizes = [8, 128], strides = [1, 1]} : vector<24x128xf32> to vector<8x128xf32>
    %c0_38 = arith.constant 0 : index
    %c256 = arith.constant 256 : index
    %85 = vector.load %arg5[%c0_38, %c256] : memref<8x1280xf32, #tpu.memory_space<vmem>>, vector<8x128xf32>
    tpu.vector_store %arg5[%c0_38, %c256], %84 {strides = array<i32>} : memref<8x1280xf32, #tpu.memory_space<vmem>>, vector<8x128xf32>,
    %86 = vector.extract_strided_slice %77 {offsets = [16, 0], sizes = [8, 128], strides = [1, 1]} : vector<24x128xf32> to vector<8x128xf32>
    %c0_39 = arith.constant 0 : index
    %c384 = arith.constant 384 : index
    %87 = vector.load %arg5[%c0_39, %c384] : memref<8x1280xf32, #tpu.memory_space<vmem>>, vector<8x128xf32>
    tpu.vector_store %arg5[%c0_39, %c384], %86 {strides = array<i32>} : memref<8x1280xf32, #tpu.memory_space<vmem>>, vector<8x128xf32>,
    %88 = vector.extract_strided_slice %80 {offsets = [0, 0], sizes = [8, 128], strides = [1, 1]} : vector<48x128xf32> to vector<8x128xf32>
    %c0_40 = arith.constant 0 : index
    %c512 = arith.constant 512 : index
    %89 = vector.load %arg5[%c0_40, %c512] : memref<8x1280xf32, #tpu.memory_space<vmem>>, vector<8x128xf32>
    tpu.vector_store %arg5[%c0_40, %c512], %88 {strides = array<i32>} : memref<8x1280xf32, #tpu.memory_space<vmem>>, vector<8x128xf32>,
    %90 = vector.extract_strided_slice %80 {offsets = [8, 0], sizes = [8, 128], strides = [1, 1]} : vector<48x128xf32> to vector<8x128xf32>
    %c0_41 = arith.constant 0 : index
    %c640 = arith.constant 640 : index
    %91 = vector.load %arg5[%c0_41, %c640] : memref<8x1280xf32, #tpu.memory_space<vmem>>, vector<8x128xf32>
    tpu.vector_store %arg5[%c0_41, %c640], %90 {strides = array<i32>} : memref<8x1280xf32, #tpu.memory_space<vmem>>, vector<8x128xf32>,
    %92 = vector.extract_strided_slice %80 {offsets = [16, 0], sizes = [8, 128], strides = [1, 1]} : vector<48x128xf32> to vector<8x128xf32>
    %c0_42 = arith.constant 0 : index
    %c768 = arith.constant 768 : index
    %93 = vector.load %arg5[%c0_42, %c768] : memref<8x1280xf32, #tpu.memory_space<vmem>>, vector<8x128xf32>
    tpu.vector_store %arg5[%c0_42, %c768], %92 {strides = array<i32>} : memref<8x1280xf32, #tpu.memory_space<vmem>>, vector<8x128xf32>,
    %94 = vector.extract_strided_slice %80 {offsets = [24, 0], sizes = [8, 128], strides = [1, 1]} : vector<48x128xf32> to vector<8x128xf32>
    %c0_43 = arith.constant 0 : index
    %c896 = arith.constant 896 : index
    %95 = vector.load %arg5[%c0_43, %c896] : memref<8x1280xf32, #tpu.memory_space<vmem>>, vector<8x128xf32>
    tpu.vector_store %arg5[%c0_43, %c896], %94 {strides = array<i32>} : memref<8x1280xf32, #tpu.memory_space<vmem>>, vector<8x128xf32>,
    %96 = vector.extract_strided_slice %80 {offsets = [32, 0], sizes = [8, 128], strides = [1, 1]} : vector<48x128xf32> to vector<8x128xf32>
    %c0_44 = arith.constant 0 : index
    %c1024 = arith.constant 1024 : index
    %97 = vector.load %arg5[%c0_44, %c1024] : memref<8x1280xf32, #tpu.memory_space<vmem>>, vector<8x128xf32>
    tpu.vector_store %arg5[%c0_44, %c1024], %96 {strides = array<i32>} : memref<8x1280xf32, #tpu.memory_space<vmem>>, vector<8x128xf32>,
    %98 = vector.extract_strided_slice %80 {offsets = [40, 0], sizes = [8, 128], strides = [1, 1]} : vector<48x128xf32> to vector<8x128xf32>
    %c0_45 = arith.constant 0 : index
    %c1152 = arith.constant 1152 : index
    %99 = vector.load %arg5[%c0_45, %c1152] : memref<8x1280xf32, #tpu.memory_space<vmem>>, vector<8x128xf32>
    tpu.vector_store %arg5[%c0_45, %c1152], %98 {strides = array<i32>} : memref<8x1280xf32, #tpu.memory_space<vmem>>, vector<8x128xf32>,
    return
  }
  func.func @transform_0(%arg0: i32) -> (i32, i32, i32) {
    %c0_i32 = arith.constant 0 : i32
    %c0_i32_0 = arith.constant 0 : i32
    %c0_i32_1 = arith.constant 0 : i32
    return %c0_i32, %arg0, %c0_i32_0 : i32, i32, i32
  }
  func.func @transform_1(%arg0: i32) -> (i32, i32) {
    %c0_i32 = arith.constant 0 : i32
    %c0_i32_0 = arith.constant 0 : i32
    %c0_i32_1 = arith.constant 0 : i32
    return %c0_i32, %c0_i32_0 : i32, i32
  }
  func.func @transform_2(%arg0: i32) -> (i32, i32) {
    %c0_i32 = arith.constant 0 : i32
    %c0_i32_0 = arith.constant 0 : i32
    %c0_i32_1 = arith.constant 0 : i32
    return %c0_i32, %c0_i32_0 : i32, i32
  }
  func.func @transform_3(%arg0: i32) -> (i32, i32) {
    %c0_i32 = arith.constant 0 : i32
    %c0_i32_0 = arith.constant 0 : i32
    %c0_i32_1 = arith.constant 0 : i32
    return %c0_i32, %c0_i32_0 : i32, i32
  }
  func.func @transform_4(%arg0: i32) -> (i32, i32) {
    %c0_i32 = arith.constant 0 : i32
    %c0_i32_0 = arith.constant 0 : i32
    return %arg0, %c0_i32 : i32, i32
  }
}

</mosaic_0001>

<bundles_post_ra>
// kernel: tpu_custom_call.1
= control target key start
LH: loop header
LB: loop body
LE: loop exit
PB: predicated region body
PF: predicated region fallthrough
CT: control target
= control target key end

     0   :  { %9 = vsyncpa [#allocation3], 0  ;;  %s3169_s0 = inlined_call_operand.hbm [shape: f32[9,24,128], index: 0, kind: input, shape index: {}]   ;;  %s3170_s1 = inlined_call_operand.hbm [shape: f32[128,128], index: 1, kind: input, shape index: {}]   ;;  %s3171_s2 = inlined_call_operand.hbm [shape: f32[128,128], index: 2, kind: input, shape index: {}]   ;;  %s3172_s3 = inlined_call_operand.hbm [shape: f32[128,128], index: 3, kind: input, shape index: {}]   ;;  %s3173_s4 = inlined_call_operand.hbm [shape: f32[24,1280], index: 4, kind: output, shape index: {}]  }
   0x1   :  { %11 = vsyncpa [#allocation3 + $0x1], 0 }
   0x2   :  { %12 = vsyncpa [#allocation6], 0 }
   0x3   :  { %13 = vsyncpa [#allocation9], 0 }
   0x4   :  { %14 = vsyncpa [#allocation4], 0 }
   0x5   :  { %16 = vsyncpa [#allocation4 + $0x1], 0  ;;  %s2125_s15 = smov 0   ;;  %s2127_s16 = smov 0  }
   0x6   :  { %s2129_s17 = smov 0   ;;  %s2131_s18 = smov 0  }
   0x7 LB: > { %s2146_s19 = sadd.s32 4294967295, %s2092_s18   ;;  %s1758_s20 = sadd.s32 4294967294, %s2092_s18   ;;  %s2092_s18 = sphi %s2131_s18, %s3278_s18   ;;  %s2088_s17 = sphi %s2129_s17, %s3277_s17   ;;  %s2084_s16 = sphi %s2127_s16, %s3276_s16   ;;  %s2080_s15 = sphi %s2125_s15, %s3275_s15  }
   0x8   : > { %p42_p0 = scmp.ne.s32.totalorder %s2084_s16, %s2080_s15  ;;  %p43_p1 = scmp.eq.s32.totalorder %s2146_s19, 0 }
   0x9   : > { %p129_p2 = scmp.eq.s32.totalorder %s2146_s19, 2  ;;  %p135_p3 = scmp.eq.s32.totalorder %s1758_s20, 2 }
   0xa   : > { %p2155_p4 = por %p43_p1, %p42_p0  ;;  %p1759_p5 = scmp.ge.s32.totalorder %s2092_s18, 1 }
   0xb   : > { %p2160_p6 = por %p135_p3, %p42_p0  ;;  %p142_p7 = scmp.lt.s32.totalorder %s2092_s18, 4 }
   0xc   : > { %s153_s25 = sshll.u32 %s3170_s1, 4  ;;  %s2094_s27 = smov [#allocation5]   ;;  %s154_s25 = int_to_ptr.hbm [resolvable:$true] %s153_s25 }
   0xd   : > { %p2168_p8 = pnand %p1759_p5, %p142_p7  ;;  %s155_s28 = sshll.u32 %s2094_s27, 4  ;;  %s156_s28 = int_to_ptr.vmem [resolvable:$true] %s155_s28 }
   0xe   : > { %s167_s6 = sshll.u32 %s3171_s2, 4  ;;  %s3174_s7 = smov 128   ;;  %s168_s6 = int_to_ptr.hbm [resolvable:$true] %s167_s6 }
   0xf   : > { %p1832_p9 = pneg %p2168_p8  ;;  %s3175_s8 = smov 8  }
  0x10   : > { %s2097_s9 = smov [#allocation7]   ;;  %s181_s13 = sshll.u32 %s3172_s3, 4  ;;  %s182_s13 = int_to_ptr.hbm [resolvable:$true] %s181_s13 }
  0x11   : > { %p2176_p10 = pnand %p1832_p9, %p43_p1  ;;  %s169_s10 = sshll.u32 %s2097_s9, 4  ;;  %s170_s10 = int_to_ptr.vmem [resolvable:$true] %s169_s10 }
  0x12   : > { %s2098_s14 = smov [#allocation8]   ;;  %s2197_s23 = sadd.s32 1, %s2092_s18  }
  0x13   : > { %1835 = dma.hbm_to_vmem [thread:$0]  (!%p2176_p10), %s154_s25, 2048, %s156_s28, [#allocation6], %s3174_s7, %s3174_s7, %s3175_s8  }
  0x14   : > { %1838 = dma.hbm_to_vmem [thread:$0]  (!%p2176_p10), %s168_s6, 2048, %s170_s10, [#allocation6], %s3174_s7, %s3174_s7, %s3175_s8  }
  0x15   : > { %s183_s20 = sshll.u32 %s2098_s14, 4  ;;  %s26_s24 = ssub.s32 %s2092_s18, %s2197_s23  ;;  %s184_s20 = int_to_ptr.vmem [resolvable:$true] %s183_s20 }
  0x16   : > { %1841 = dma.hbm_to_vmem [thread:$0]  (!%p2176_p10), %s182_s13, 2048, %s184_s20, [#allocation9], %s3174_s7, %s3174_s7, %s3175_s8  }
  0x17   : > { %s29_s25 = sadd.s32 1, %s2088_s17  ;;  %p27_p11 = scmp.eq.s32.totalorder %s26_s24, 0 }
  0x18   : > { %p36_p12 = scmp.ne.s32.totalorder %s2088_s17, %s2084_s16  ;;  %p37_p13 = scmp.eq.s32.totalorder %s2092_s18, 0 }
  0x19   : > { %p1853_p0 = scmp.lt.s32.totalorder %s2092_s18, 3  ;;  %s197_s29 = sand.u32 1, %s2088_s17  }
  0x1a   : > { %s2212_s27 = scalar_select %p27_p11, %s2088_s17, %s29_s25  }
  0x1b   : > { %p38_p3 = por %p37_p13, %p36_p12  ;;  %p2216_p5 = por %p129_p2, %p36_p12 }
  0x1c   : > { %s1764_s30 = sshll.u32 %s2092_s18, 3  ;;  %s1812_s5 = smul.u32 72, %s197_s29 }
  0x1d   : > { %s205_s10 = scalar_lea.hbm %s3169_s0, %s1764_s30  ;;  %p2225_p7 = pnand %p1853_p0, %p38_p3 }
  0x1e   : > { %s206_s12 = sshll.u32 %s205_s10, 4  ;;  %s201_s13 = scalar_lea.vmem [#allocation2], %s1812_s5  ;;  %s207_s12 = int_to_ptr.hbm [resolvable:$true] %s206_s12 }
  0x1f   : > { %s208_s14 = sshll.u32 %s201_s13, 4  ;;  %s198_s20 = scalar_lea.sflag [#allocation3], %s197_s29  ;;  %s209_s14 = int_to_ptr.vmem [resolvable:$true] %s208_s14 }
  0x20   : > { %s1988_s24 = sshra.s32 %s207_s12, 4  ;;  %p1992_p9 = pneg %p2225_p7  ;;  %s1989_s24 = int_to_ptr.hbm [resolvable:$true] %s1988_s24 }
  0x21   : > { %s1990_s25 = scalar_lea.hbm %s1989_s24, 72  ;;  %s1995_s9 = scalar_lea.hbm %s3169_s0, 216 }
  0x22   : > { %p1991_p2 = scmp.ne.s32.totalorder %s1989_s24, %s1990_s25  ;;  %p1996_p12 = scmp.lt.s32.totalorder %s1989_s24, %s3169_s0 }
  0x23   : > { %p1997_p13 = scmp.lt.s32.totalorder %s1995_s9, %s1990_s25 }
  0x24   : > { %p1993_p10 = pnand %p1992_p9, %p1991_p2 }
  0x25   : > { %p1998_p0 = por %p1997_p13, %p1996_p12 }
  0x26   : > { %p1994_p11 = pneg %p1993_p10 }
  0x28   : > { %p1999_p3 = pnand %p1998_p0, %p1994_p11 }
  0x2a   : > { %2002 = shalt.err (!%p1999_p3)
}
  0x2b   : > { %s2099_s29 = smov 384   ;;  %s3218_s5 = smov 8  }
  0x2c   : > { %s3219_s10 = smov 128   ;;  %220 = sbr.rel (%p2168_p8) target bundleno = 422 (0x1a6), region = 36 }
  0x2d   : > { %1845 = dma.hbm_to_vmem [thread:$0]  (!%p2225_p7), %s207_s12, 1152, %s209_s14, %s198_s20, %s2099_s29, %s3219_s10, %s3218_s5  }
  0x31   : > { %s2244_s13 = sand.u32 1, %s2084_s16  }
  0x32   : > { %s1813_s7 = smul.u32 72, %s2244_s13  ;;  %s223_s8 = scalar_lea.sflag [#allocation3], %s2244_s13 }
  0x34   : > { %s2248_s24 = scalar_lea.vmem [#allocation2], %s1813_s7 }
  0x35   : > { %2063 = dma.done.wait (%p2155_p4), %s223_s8, 1152  }
  0x36   : > { %2065 = vsyncadd (%p2155_p4), %s223_s8, 4294966144 }
  0x37   : > { %2067 = dma.done.wait (%p43_p1), [#allocation6], 4096  }
  0x38   : > { %2069 = vsyncadd (%p43_p1), [#allocation6], 4294963200 }
  0x39   : > { %2071 = dma.done.wait (%p43_p1), [#allocation9], 2048  }
  0x3a   : > { %2073 = vsyncadd (%p43_p1), [#allocation9], 4294965248  ;;  %v359_v0 = vld [vmem:[#allocation5 + $0x78] sm:$0xff]  ;;  %v358_v1 = vld [vmem:[#allocation5 + $0x70] sm:$0xff]  ;;  %s1814_s21 = smul.u32 80, %s2244_s13  ;;  %s1643_s30 = scalar_lea.sflag [#allocation4], %s2244_s13 }
  0x3b   : > { %v357_v2 = vld [vmem:[#allocation5 + $0x68] sm:$0xff]  ;;  %v2262_v3 = vand.u32 4294901760, %v359_v0  ;;  %v2264_v4 = vand.u32 4294901760, %v358_v1  ;;  %v356_v6 = vld [vmem:[#allocation5 + $0x60] sm:$0xff]  ;;  %v355_v7 = vld [vmem:[#allocation5 + $0x58] sm:$0xff]  ;;  %s1815_s11 = smul.u32 80, %s2146_s19 }
  0x3c   : > { %v2266_v5 = vand.u32 4294901760, %v357_v2  ;;  %v354_v8 = vld [vmem:[#allocation5 + $0x50] sm:$0xff]  ;;  %v2268_v9 = vand.u32 4294901760, %v356_v6  ;;  %v2270_v10 = vand.u32 4294901760, %v355_v7  ;;  %v353_v12 = vld [vmem:[#allocation5 + $0x48] sm:$0xff]  ;;  %v352_v13 = vld [vmem:[#allocation5 + $0x40] sm:$0xff] }
  0x3d   : > { %v2272_v11 = vand.u32 4294901760, %v354_v8  ;;  %361 = vmatpush.msra.mxu0 %v2262_v3  ;;  %v2276_v14 = vsub.f32 %v359_v0, %v2262_v3  ;;  %v2279_v15 = vsub.f32 %v358_v1, %v2264_v4  ;;  %557 = vmatpush.msra.mxu3 %v2262_v3  ;;  %v2285_v17 = vand.u32 4294901760, %v353_v12  ;;  %v351_v18 = vld [vmem:[#allocation5 + $0x38] sm:$0xff]  ;;  %v350_v26 = vld [vmem:[#allocation5 + $0x30] sm:$0xff]  ;;  %v349_v34 = vld [vmem:[#allocation5 + $0x28] sm:$0xff]  ;;  %s3124_s26 = scalar_lea.vmem [#allocation10], %s1814_s21  ;;  %s1654_s20 = scalar_lea.hbm %s3173_s4, %s1815_s11 }
  0x3e   : > { %v2283_v16 = vsub.f32 %v357_v2, %v2266_v5  ;;  %v2288_v19 = vsub.f32 %v356_v6, %v2268_v9  ;;  %v2291_v20 = vsub.f32 %v355_v7, %v2270_v10  ;;  %v2293_v21 = vand.u32 4294901760, %v352_v13  ;;  %v348_v43 = vld [vmem:[#allocation5 + $0x20] sm:$0xff]  ;;  %v347_v48 = vld [vmem:[#allocation5 + $0x18] sm:$0xff]  ;;  %v346_v55 = vld [vmem:[#allocation5 + $0x10] sm:$0xff]  ;;  %s1656_s19 = sshll.u32 %s3124_s26, 4  ;;  %s1658_s25 = sshll.u32 %s1654_s20, 4  ;;  %s1657_s19 = int_to_ptr.vmem [resolvable:$true] %s1656_s19  ;;  %s1659_s25 = int_to_ptr.hbm [resolvable:$true] %s1658_s25 }
  0x3f   : > { %363 = vmatpush.msra.mxu0 %v2264_v4  ;;  %504 = vmatpush.msra.mxu2 %v2276_v14  ;;  %v403_v22 = vand.u32 4294901760, %v2276_v14  ;;  %v3191_v23 = vand.u32 4294901760, %v2279_v15  ;;  %v2301_v25 = vsub.f32 %v354_v8, %v2272_v11  ;;  %v2306_v28 = vsub.f32 %v353_v12, %v2285_v17  ;;  %v716_v59 = vld [vmem:[#allocation7 + $0x78] sm:$0xff]  ;;  %v345_v61 = vld [vmem:[#allocation5 + $0x8] sm:$0xff]  ;;  %v715_v62 = vld [vmem:[#allocation7 + $0x70] sm:$0xff]  ;;  %s2032_s6 = sshra.s32 %s1659_s25, 4  ;;  %s2033_s6 = int_to_ptr.hbm [resolvable:$true] %s2032_s6 }
  0x40   : > { %v3190_v24 = vand.u32 4294901760, %v2283_v16  ;;  %559 = vmatpush.msra.mxu3 %v2264_v4  ;;  %v3186_v27 = vand.u32 4294901760, %v2288_v19  ;;  %v2308_v29 = vand.u32 4294901760, %v351_v18  ;;  %v3185_v33 = vand.u32 4294901760, %v2291_v20  ;;  %v344_v8 = vld [vmem:[#allocation5] sm:$0xff]  ;;  %s2034_s9 = scalar_lea.hbm %s2033_s6, 80  ;;  %p2039_p7 = scmp.lt.s32.totalorder %s2033_s6, %s3173_s4 }
  0x41   : > { %365 = vmatpush.msra.mxu0 %v2266_v5  ;;  %507 = vmatpush.msra.mxu2 %v2279_v15  ;;  %v404_v30 = vsub.f32 %v2276_v14, %v403_v22  ;;  %v410_v31 = vsub.f32 %v2279_v15, %v3191_v23  ;;  %v2324_v35 = vsub.f32 %v352_v13, %v2293_v21  ;;  %v2326_v36 = vand.u32 4294901760, %v350_v26  ;;  %p2035_p1 = scmp.ne.s32.totalorder %s2033_s6, %s2034_s9  ;;  %s2038_s10 = scalar_lea.hbm %s3173_s4, 240 }
  0x42   : > { %v416_v32 = vsub.f32 %v2283_v16, %v3190_v24  ;;  %561 = vmatpush.msra.mxu3 %v2266_v5  ;;  %v422_v39 = vsub.f32 %v2288_v19, %v3186_v27  ;;  %v3183_v40 = vand.u32 4294901760, %v2301_v25  ;;  %v2336_v41 = vsub.f32 %v351_v18, %v2308_v29  ;;  %v707_v24 = vld [vmem:[#allocation7 + $0x30] sm:$0xff]  ;;  %p2040_p2 = scmp.lt.s32.totalorder %s2038_s10, %s2034_s9 }
  0x43   : > { %367 = vmatpush.msra.mxu0 %v2268_v9  ;;  %510 = vmatpush.msra.mxu2 %v2283_v16  ;;  %v405_v37 = vand.u32 4294901760, %v404_v30  ;;  %v411_v38 = vand.u32 4294901760, %v410_v31  ;;  %v2338_v42 = vand.u32 4294901760, %v349_v34  ;;  %v428_v45 = vsub.f32 %v2291_v20, %v3185_v33  ;;  %p2036_p4 = pnand %p2035_p1, %p2216_p5 }
  0x44   : > { %563 = vmatpush.msra.mxu3 %v2268_v9  ;;  %v417_v44 = vand.u32 4294901760, %v416_v32  ;;  %v3182_v46 = vand.u32 4294901760, %v2306_v28  ;;  %v3181_v47 = vand.u32 4294901760, %v2324_v35  ;;  %v423_v49 = vand.u32 4294901760, %v422_v39  ;;  %v714_v32 = vld [vmem:[#allocation7 + $0x68] sm:$0xff]  ;;  %p2041_p9 = por %p2040_p2, %p2039_p7 }
  0x45   : > { %369 = vmatpush.msra.mxu0 %v2270_v10  ;;  %406 = vmatpush.msra.mxu1 %v405_v37  ;;  %v434_v50 = vsub.f32 %v2301_v25, %v3183_v40  ;;  %v2353_v51 = vsub.f32 %v350_v26, %v2326_v36  ;;  %v2355_v52 = vand.u32 4294901760, %v348_v43  ;;  %v2360_v53 = vsub.f32 %v349_v34, %v2338_v42  ;;  %p2037_p8 = pneg %p2036_p4 }
  0x46   : > { %513 = vmatpush.msra.mxu2 %v2288_v19  ;;  %565 = vmatpush.msra.mxu3 %v2270_v10  ;;  %v3179_v54 = vand.u32 4294901760, %v2336_v41  ;;  %v429_v56 = vand.u32 4294901760, %v428_v45  ;;  %v440_v57 = vsub.f32 %v2306_v28, %v3182_v46  ;;  %v2367_v58 = vand.u32 4294901760, %v347_v48  ;;  %v709_v46 = vld [vmem:[#allocation7 + $0x40] sm:$0xff] }
  0x47   : > { %371 = vmatpush.msra.mxu0 %v2272_v11  ;;  %412 = vmatpush.msra.mxu1 %v411_v38  ;;  %v446_v60 = vsub.f32 %v2324_v35, %v3181_v47  ;;  %v435_v63 = vand.u32 4294901760, %v434_v50  ;;  %v2376_v0 = vsub.f32 %v348_v43, %v2355_v52  ;;  %v2378_v1 = vand.u32 4294901760, %v346_v55  ;;  %v713_v43 = vld [vmem:[#allocation7 + $0x60] sm:$0xff]  ;;  %p2042_p10 = pnand %p2041_p9, %p2037_p8 }
  0x48   : > { %516 = vmatpush.msra.mxu2 %v2291_v20  ;;  %567 = vmatpush.msra.mxu3 %v2272_v11  ;;  %v3177_v2 = vand.u32 4294901760, %v2353_v51  ;;  %v452_v6 = vsub.f32 %v2336_v41, %v3179_v54  ;;  %v3176_v7 = vand.u32 4294901760, %v2360_v53  ;;  %v2387_v12 = vand.u32 4294901760, %v716_v59  ;;  %v710_v54 = vld [vmem:[#allocation7 + $0x48] sm:$0xff] }
  0x49   : > { %373 = vmatpush.msra.mxu0 %v2285_v17  ;;  %418 = vmatpush.msra.mxu1 %v417_v44  ;;  %v441_v13 = vand.u32 4294901760, %v440_v57  ;;  %v2391_v18 = vsub.f32 %v347_v48, %v2367_v58  ;;  %v2393_v26 = vand.u32 4294901760, %v345_v61  ;;  %v2395_v30 = vand.u32 4294901760, %v715_v62  ;;  %v712_v57 = vld [vmem:[#allocation7 + $0x58] sm:$0xff] }
  0x4a   : > { %519 = vmatpush.msra.mxu2 %v2301_v25  ;;  %569 = vmatpush.msra.mxu3 %v2285_v17  ;;  %3220 = vst [vmem:[#allocation15_spill] sm:$0xff] %v2387_v12  ;;  %v447_v31 = vand.u32 4294901760, %v446_v60  ;;  %v458_v34 = vsub.f32 %v2353_v51, %v3177_v2  ;;  %v2404_v37 = vsub.f32 %v346_v55, %v2378_v1  ;;  %v2406_v38 = vand.u32 4294901760, %v344_v8 }
  0x4b   : > { %375 = vmatpush.msra.mxu0 %v2293_v21  ;;  %424 = vmatpush.msra.mxu1 %v423_v49  ;;  %3221 = vst [vmem:[#allocation16_spill] sm:$0xff] %v2393_v26  ;;  %v3178_v39 = vand.u32 4294901760, %v2376_v0  ;;  %v453_v44 = vand.u32 4294901760, %v452_v6  ;;  %v464_v45 = vsub.f32 %v2360_v53, %v3176_v7  ;;  %v2415_v48 = vsub.f32 %v716_v59, %v2387_v12  ;;  %v711_v6 = vld [vmem:[#allocation7 + $0x50] sm:$0xff] }
  0x4c   : > { %522 = vmatpush.msra.mxu2 %v2306_v28  ;;  %571 = vmatpush.msra.mxu3 %v2293_v21  ;;  %3222 = vst [vmem:[#allocation17_spill] sm:$0xff] %v2395_v30  ;;  %v2419_v49 = vsub.f32 %v345_v61, %v2393_v26  ;;  %v3180_v50 = vand.u32 4294901760, %v2391_v18  ;;  %v2422_v55 = vand.u32 4294901760, %v714_v32  ;;  %v2429_v59 = vand.u32 4294901760, %v713_v43 }
  0x4d   : > { %377 = vmatpush.msra.mxu0 %v2308_v29  ;;  %430 = vmatpush.msra.mxu1 %v429_v56  ;;  %3223 = vst [vmem:[#allocation18_spill] sm:$0xff] %v2406_v38  ;;  %v2425_v56 = vsub.f32 %v715_v62, %v2395_v30  ;;  %v459_v60 = vand.u32 4294901760, %v458_v34  ;;  %v470_v61 = vsub.f32 %v2376_v0, %v3178_v39  ;;  %v3184_v62 = vand.u32 4294901760, %v2404_v37 }
  0x4e   : > { %525 = vmatpush.msra.mxu2 %v2324_v35  ;;  %573 = vmatpush.msra.mxu3 %v2308_v29  ;;  %3224 = vst [vmem:[#allocation19_spill] sm:$0xff] %v2415_v48  ;;  %v3187_v7 = vand.u32 4294901760, %v2415_v48  ;;  %v2442_v2 = vand.u32 4294901760, %v712_v57  ;;  %v2451_v39 = vsub.f32 %v714_v32, %v2422_v55 }
  0x4f   : > { %379 = vmatpush.msra.mxu0 %v2326_v36  ;;  %436 = vmatpush.msra.mxu1 %v435_v63  ;;  %3225 = vst [vmem:[#allocation20_spill] sm:$0xff] %v2425_v56  ;;  %v2436_v63 = vsub.f32 %v344_v8, %v2406_v38  ;;  %v476_v8 = vsub.f32 %v2391_v18, %v3180_v50  ;;  %v3188_v34 = vand.u32 4294901760, %v2425_v56  ;;  %v471_v50 = vand.u32 4294901760, %v470_v61 }
  0x50   : > { %528 = vmatpush.msra.mxu2 %v2336_v41  ;;  %575 = vmatpush.msra.mxu3 %v2326_v36  ;;  %3226 = vst [vmem:[#allocation21_spill] sm:$0xff] %v2451_v39  ;;  %v482_v47 = vsub.f32 %v2404_v37, %v3184_v62  ;;  %v2471_v40 = vsub.f32 %v712_v57, %v2442_v2 }
  0x51   : > { %381 = vmatpush.msra.mxu0 %v2338_v42  ;;  %442 = vmatpush.msra.mxu1 %v441_v13  ;;  %v465_v13 = vand.u32 4294901760, %v464_v45  ;;  %v2456_v45 = vsub.f32 %v713_v43, %v2429_v59  ;;  %v3192_v32 = vand.u32 4294901760, %v2436_v63  ;;  %v777_v43 = vsub.f32 %v2415_v48, %v3187_v7  ;;  %v708_v7 = vld [vmem:[#allocation7 + $0x38] sm:$0xff] }
  0x52   : > { %531 = vmatpush.msra.mxu2 %v2353_v51  ;;  %577 = vmatpush.msra.mxu3 %v2338_v42  ;;  %3228 = vst [vmem:[#allocation23_spill] sm:$0xff] %v2471_v40  ;;  %v477_v61 = vand.u32 4294901760, %v476_v8  ;;  %v783_v33 = vsub.f32 %v2425_v56, %v3188_v34  ;;  %v2489_v8 = vand.u32 4294901760, %v709_v46  ;;  %v483_v34 = vand.u32 4294901760, %v482_v47  ;;  %v2505_v47 = vld [vmem:[%s2248_s24] sm:$0xff] }
  0x53   : > { %383 = vmatpush.msra.mxu0 %v2355_v52  ;;  %448 = vmatpush.msra.mxu1 %v447_v31  ;;  %v3189_v31 = vand.u32 4294901760, %v2419_v49  ;;  %3227 = vst [vmem:[#allocation22_spill] sm:$0xff] %v2456_v45  ;;  %v778_v57 = vand.u32 4294901760, %v777_v43  ;;  %v2502_v27 = vand.u32 4294901760, %v708_v7  ;;  %v3231_v43 = vand.u32 4294901760, %v2451_v39 }
  0x54   : > { %534 = vmatpush.msra.mxu2 %v2360_v53  ;;  %579 = vmatpush.msra.mxu3 %v2355_v52  ;;  %v3233_v56 = vand.u32 4294901760, %v2456_v45 }
  0x55   : > { %385 = vmatpush.msra.mxu0 %v2367_v58  ;;  %454 = vmatpush.msra.mxu1 %v453_v44  ;;  %v2458_v44 = vand.u32 4294901760, %v711_v6  ;;  %v488_v62 = vsub.f32 %v2419_v49, %v3189_v31  ;;  %v494_v31 = vsub.f32 %v2436_v63, %v3192_v32  ;;  %v2511_v32 = vld [vmem:[%s2248_s24 + $0x10] sm:$0xff] }
  0x56   : > { %537 = vmatpush.msra.mxu2 %v2376_v0  ;;  %581 = vmatpush.msra.mxu3 %v2367_v58  ;;  %3230 = vst [vmem:[#allocation25_spill] sm:$0xff] %v2511_v32  ;;  %v795_v48 = vsub.f32 %v2456_v45, %v3233_v56 }
  0x57   : > { %387 = vmatpush.msra.mxu0 %v2378_v1  ;;  %460 = vmatpush.msra.mxu1 %v459_v60  ;;  %v2473_v60 = vand.u32 4294901760, %v710_v54  ;;  %v489_v14 = vand.u32 4294901760, %v488_v62  ;;  %v706_v62 = vld [vmem:[#allocation7 + $0x28] sm:$0xff] }
  0x58   : > { %540 = vmatpush.msra.mxu2 %v2391_v18  ;;  %583 = vmatpush.msra.mxu3 %v2378_v1 }
  0x59   : > { %389 = vmatpush.msra.mxu0 %v2393_v26  ;;  %466 = vmatpush.msra.mxu1 %v465_v13  ;;  %v2487_v13 = vsub.f32 %v711_v6, %v2458_v44  ;;  %v2500_v23 = vsub.f32 %v710_v54, %v2473_v60  ;;  %v789_v6 = vsub.f32 %v2451_v39, %v3231_v43  ;;  %v3232_v54 = vand.u32 4294901760, %v2279_v15  ;;  %v705_v39 = vld [vmem:[#allocation7 + $0x20] sm:$0xff] }
  0x5a   : > { %543 = vmatpush.msra.mxu2 %v2404_v37  ;;  %585 = vmatpush.msra.mxu3 %v2393_v26  ;;  %v495_v15 = vand.u32 4294901760, %v494_v31  ;;  %v284_v43 = vmul.f32 %v2505_v47, %v2505_v47  ;;  %v3235_v26 = vand.u32 4294901760, %v2471_v40  ;;  %v2546_v31 = vsub.f32 %v708_v7, %v2502_v27 }
  0x5b   : > { %3229 = vst [vmem:[#allocation24_spill] sm:$0xff] %v2487_v13  ;;  %391 = vmatpush.msra.mxu0 %v2406_v38  ;;  %472 = vmatpush.msra.mxu1 %v471_v50  ;;  %v2508_v50 = vld [vmem:[%s2248_s24 + $0x8] sm:$0xff]  ;;  %v3237_v7 = vand.u32 4294901760, %v2487_v13 }
  0x5c   : > { %546 = vmatpush.msra.mxu2 %v2419_v49  ;;  %587 = vmatpush.msra.mxu3 %v2406_v38  ;;  %v2530_v38 = vld [vmem:[%s2248_s24 + $0x18] sm:$0xff]  ;;  %v285_v56 = vmul.f32 %v2508_v50, %v2508_v50  ;;  %v801_v45 = vsub.f32 %v2471_v40, %v3235_v26  ;;  %v3236_v26 = vand.u32 4294901760, %v2288_v19  ;;  %v2569_v19 = vand.u32 4294901760, %v705_v39 }
  0x5d   : > { %598 = vmatpush.msrb.mxu0 %v403_v22  ;;  %478 = vmatpush.msra.mxu1 %v477_v61  ;;  %v784_v22 = vand.u32 4294901760, %v783_v33  ;;  %v2525_v61 = vsub.f32 %v709_v46, %v2489_v8  ;;  %v2527_v33 = vand.u32 4294901760, %v707_v24  ;;  %v287_v46 = vmul.f32 %v2511_v32, %v2511_v32 }
  0x5e   : > { %549 = vmatpush.msra.mxu2 %v2436_v63  ;;  %779 = vmatpush.msrb.mxu3 %v778_v57  ;;  %v790_v32 = vand.u32 4294901760, %v789_v6  ;;  %v286_v57 = vadd.f32 %v285_v56, %v284_v43  ;;  %v704_v6 = vld [vmem:[#allocation7 + $0x18] sm:$0xff]  ;;  %v796_v43 = vand.u32 4294901760, %v795_v48  ;;  %v703_v48 = vld [vmem:[#allocation7 + $0x10] sm:$0xff] }
  0x5f   : > { %602 = vmatpush.msrb.mxu0 %v3232_v54  ;;  %484 = vmatpush.msra.mxu1 %v483_v34  ;;  %v3234_v54 = vand.u32 4294901760, %v2283_v16  ;;  %v2552_v16 = vand.u32 4294901760, %v706_v62  ;;  %v807_v34 = vsub.f32 %v2487_v13, %v3237_v7  ;;  %v3239_v7 = vand.u32 4294901760, %v2500_v23  ;;  %v2581_v13 = vld [vmem:[%s2248_s24 + $0x30] sm:$0xff] }
  0x60   : > { %718 = vmatpush.msrb.mxu2 %v2387_v12  ;;  %v2549_v12 = vld [vmem:[%s2248_s24 + $0x20] sm:$0xff]  ;;  %785 = vmatpush.msrb.mxu3 %v784_v22  ;;  %v288_v22 = vadd.f32 %v287_v46, %v286_v57  ;;  %v3240_v57 = vand.u32 4294901760, %v2301_v25  ;;  %v2605_v25 = vand.u32 4294901760, %v703_v48 }
  0x61   : > { %606 = vmatpush.msrb.mxu0 %v3234_v54  ;;  %490 = vmatpush.msra.mxu1 %v489_v14  ;;  %v289_v54 = vmul.f32 %v2530_v38, %v2530_v38  ;;  %v2563_v14 = vsub.f32 %v707_v24, %v2527_v33  ;;  %v291_v56 = vmul.f32 %v2549_v12, %v2549_v12  ;;  %v802_v24 = vand.u32 4294901760, %v801_v45 }
  0x62   : > { %720 = vmatpush.msrb.mxu2 %v2395_v30  ;;  %v2566_v30 = vld [vmem:[%s2248_s24 + $0x28] sm:$0xff]  ;;  %v813_v40 = vsub.f32 %v2500_v23, %v3239_v7  ;;  %791 = vmatpush.msrb.mxu3 %v790_v32  ;;  %v2585_v46 = vsub.f32 %v706_v62, %v2552_v16  ;;  %v3241_v7 = vand.u32 4294901760, %v2525_v61 }
  0x63   : > { %610 = vmatpush.msrb.mxu0 %v3236_v26  ;;  %496 = vmatpush.msra.mxu1 %v495_v15  ;;  %v3238_v26 = vand.u32 4294901760, %v2291_v20  ;;  %v2587_v20 = vand.u32 4294901760, %v704_v6  ;;  %v293_v45 = vmul.f32 %v2566_v30, %v2566_v30  ;;  %v2599_v15 = vld [vmem:[%s2248_s24 + $0x38] sm:$0xff] }
  0x64   : > { %722 = vmatpush.msrb.mxu2 %v2422_v55  ;;  %v819_v32 = vsub.f32 %v2525_v61, %v3241_v7  ;;  %797 = vmatpush.msrb.mxu3 %v796_v43  ;;  %v3243_v7 = vand.u32 4294901760, %v2546_v31  ;;  %v2616_v43 = vld [vmem:[%s2248_s24 + $0x40] sm:$0xff] }
  0x65   : > { %614 = vmatpush.msrb.mxu0 %v3238_v26  ;;  %665 = vmatpush.msrb.mxu1 %v2262_v3  ;;  %v290_v3 = vadd.f32 %v289_v54, %v288_v22  ;;  %v808_v26 = vand.u32 4294901760, %v807_v34  ;;  %v2603_v54 = vsub.f32 %v705_v39, %v2569_v19  ;;  %v3242_v34 = vand.u32 4294901760, %v2306_v28 }
  0x66   : > { %724 = vmatpush.msrb.mxu2 %v2429_v59  ;;  %v825_v62 = vsub.f32 %v2546_v31, %v3243_v7  ;;  %803 = vmatpush.msrb.mxu3 %v802_v24  ;;  %v836_v39 = vand.u32 4294901760, %v2585_v46  ;;  %v3245_v7 = vand.u32 4294901760, %v2563_v14 }
  0x67   : > { %618 = vmatpush.msrb.mxu0 %v3240_v57  ;;  %667 = vmatpush.msrb.mxu1 %v2264_v4  ;;  %v292_v22 = vadd.f32 %v291_v56, %v290_v3  ;;  %v295_v4 = vmul.f32 %v2581_v13, %v2581_v13  ;;  %v814_v57 = vand.u32 4294901760, %v813_v40  ;;  %v2621_v56 = vsub.f32 %v704_v6, %v2587_v20  ;;  %v702_v3 = vld [vmem:[#allocation7 + $0x8] sm:$0xff] }
  0x68   : > { %726 = vmatpush.msrb.mxu2 %v2442_v2  ;;  %v3244_v40 = vand.u32 4294901760, %v2324_v35  ;;  %v831_v24 = vsub.f32 %v2563_v14, %v3245_v7  ;;  %809 = vmatpush.msrb.mxu3 %v808_v26  ;;  %v842_v6 = vand.u32 4294901760, %v2603_v54  ;;  %v299_v35 = vmul.f32 %v2616_v43, %v2616_v43  ;;  %v701_v7 = vld [vmem:[#allocation7] sm:$0xff] }
  0x69   : > { %622 = vmatpush.msrb.mxu0 %v3242_v34  ;;  %669 = vmatpush.msrb.mxu1 %v2266_v5  ;;  %v294_v28 = vadd.f32 %v293_v45, %v292_v22  ;;  %v297_v5 = vmul.f32 %v2599_v15, %v2599_v15  ;;  %v820_v34 = vand.u32 4294901760, %v819_v32  ;;  %v2634_v45 = vsub.f32 %v703_v48, %v2605_v25 }
  0x6a   : > { %728 = vmatpush.msrb.mxu2 %v2458_v44  ;;  %815 = vmatpush.msrb.mxu3 %v814_v57  ;;  %v826_v26 = vand.u32 4294901760, %v825_v62  ;;  %v837_v48 = vsub.f32 %v2585_v46, %v836_v39  ;;  %v848_v32 = vand.u32 4294901760, %v2621_v56 }
  0x6b   : > { %626 = vmatpush.msrb.mxu0 %v3244_v40  ;;  %671 = vmatpush.msrb.mxu1 %v2268_v9  ;;  %v296_v22 = vadd.f32 %v295_v4, %v294_v28  ;;  %v3246_v40 = vand.u32 4294901760, %v2336_v41  ;;  %v2641_v9 = vand.u32 4294901760, %v702_v3  ;;  %v3247_v28 = vand.u32 4294901760, %v2353_v51 }
  0x6c   : > { %730 = vmatpush.msrb.mxu2 %v2473_v60  ;;  %821 = vmatpush.msrb.mxu3 %v820_v34  ;;  %v843_v41 = vsub.f32 %v2603_v54, %v842_v6  ;;  %v854_v62 = vand.u32 4294901760, %v2634_v45  ;;  %v2659_v51 = vand.u32 4294901760, %v701_v7  ;;  %v849_v34 = vsub.f32 %v2621_v56, %v848_v32 }
  0x6d   : > { %630 = vmatpush.msrb.mxu0 %v3246_v40  ;;  %673 = vmatpush.msrb.mxu1 %v2270_v10  ;;  %v298_v4 = vadd.f32 %v297_v5, %v296_v22  ;;  %v832_v10 = vand.u32 4294901760, %v831_v24  ;;  %v3248_v40 = vand.u32 4294901760, %v2360_v53  ;;  %v838_v5 = vand.u32 4294901760, %v837_v48 }
  0x6e   : > { %732 = vmatpush.msrb.mxu2 %v2489_v8  ;;  %827 = vmatpush.msrb.mxu3 %v826_v26  ;;  %v3249_v22 = vand.u32 4294901760, %v2376_v0  ;;  %v2673_v53 = vsub.f32 %v701_v7, %v2659_v51  ;;  %v3250_v26 = vand.u32 4294901760, %v2391_v18  ;;  %v850_v0 = vand.u32 4294901760, %v849_v34 }
  0x6f   : > { %634 = vmatpush.msrb.mxu0 %v3247_v28  ;;  %675 = vmatpush.msrb.mxu1 %v2272_v11  ;;  %v300_v57 = vadd.f32 %v299_v35, %v298_v4  ;;  %v2662_v11 = vsub.f32 %v702_v3, %v2641_v9  ;;  %v844_v3 = vand.u32 4294901760, %v843_v41  ;;  %v855_v35 = vsub.f32 %v2634_v45, %v854_v62 }
  0x70   : > { %734 = vmatpush.msrb.mxu2 %v2502_v27  ;;  %833 = vmatpush.msrb.mxu3 %v832_v10  ;;  %v3251_v4 = vand.u32 4294901760, %v2404_v37  ;;  %v3252_v28 = vand.u32 4294901760, %v2419_v49 }
  0x71   : > { %638 = vmatpush.msrb.mxu0 %v3248_v40  ;;  %677 = vmatpush.msrb.mxu1 %v2285_v17  ;;  %v301_v24 = vadd.f32 1.0, %v300_v57  ;;  %v860_v17 = vand.u32 4294901760, %v2662_v11  ;;  %v856_v18 = vand.u32 4294901760, %v855_v35 }
  0x72   : > { %736 = vmatpush.msrb.mxu2 %v2527_v33  ;;  %839 = vmatpush.msrb.mxu3 %v838_v5  ;;  %v3254_v5 = vld [vmem:[#allocation16_spill] sm:$0xff] }
  0x73   : > { %642 = vmatpush.msrb.mxu0 %v3249_v22  ;;  %679 = vmatpush.msrb.mxu1 %v2293_v21  ;;  %1896 = vrcp.f32 %v301_v24  ;;  %v866_v21 = vand.u32 4294901760, %v2673_v53  ;;  %v861_v48 = vsub.f32 %v2662_v11, %v860_v17  ;;  %v313_v57 = vand.u32 2147483648, %v301_v24  ;;  %v3255_v22 = vld [vmem:[#allocation18_spill] sm:$0xff] }
  0x74   : > { %738 = vmatpush.msrb.mxu2 %v2552_v16  ;;  %845 = vmatpush.msrb.mxu3 %v844_v3  ;;  %vm307_vm0 = vweird.f32 %v301_v24 }
  0x75   : > { %646 = vmatpush.msrb.mxu0 %v3250_v26  ;;  %681 = vmatpush.msrb.mxu1 %v2308_v29  ;;  %v867_v29 = vsub.f32 %v2673_v53, %v866_v21  ;;  %v862_v37 = vand.u32 4294901760, %v861_v48 }
  0x76   : > { %740 = vmatpush.msrb.mxu2 %v2569_v19  ;;  %851 = vmatpush.msrb.mxu3 %v850_v0  ;;  %v3256_v0 = vld [vmem:[#allocation25_spill] sm:$0xff] }
  0x77   : > { %650 = vmatpush.msrb.mxu0 %v3251_v4  ;;  %683 = vmatpush.msrb.mxu1 %v2326_v36  ;;  %v3253_v36 = vand.u32 4294901760, %v2436_v63  ;;  %v868_v7 = vand.u32 4294901760, %v867_v29 }
  0x78   : > { %742 = vmatpush.msrb.mxu2 %v2587_v20  ;;  %857 = vmatpush.msrb.mxu3 %v856_v18 }
  0x79   : > { %654 = vmatpush.msrb.mxu0 %v3252_v28  ;;  %685 = vmatpush.msrb.mxu1 %v2338_v42  ;;  %v1897_v10 = vpop.eup %1896  ;;  %v311_v42 = vand.u32 2147483647, %v301_v24 }
  0x7a   : > { %744 = vmatpush.msrb.mxu2 %v2605_v25  ;;  %v303_v41 = vmul.f32 %v1897_v10, %v301_v24  ;;  %vm308_vm1 = vweird.f32 %v1897_v10  ;;  %863 = vmatpush.msrb.mxu3 %v862_v37 }
  0x7b   : > { %658 = vmatpush.msrb.mxu0 %v3253_v36  ;;  %687 = vmatpush.msrb.mxu1 %v2355_v52  ;;  %vm309_vm2 = vmor %vm307_vm0, %vm308_vm1  ;;  %v314_v52 = vor.u32 1.1754944e-38, %v313_v57  ;;  %vm312_vm3 = vcmp.eq.f32.partialorder %v311_v42, 8.507059e+37  ;;  %v3257_v57 = vld [vmem:[#allocation15_spill] sm:$0xff] }
  0x7c   : > { %746 = vmatpush.msrb.mxu2 %v2641_v9  ;;  %v304_v49 = vsub.f32 1.0, %v303_v41  ;;  %869 = vmatpush.msrb.mxu3 %v868_v7 }
  0x7d   : > { %689 = vmatpush.msrb.mxu1 %v2367_v58 }
  0x7e   : > { %748 = vmatpush.msrb.mxu2 %v2659_v51  ;;  %v305_v40 = vmul.f32 %v1897_v10, %v304_v49 }
  0x7f   : > { %691 = vmatpush.msrb.mxu1 %v2378_v1 }
  0x80   : > { %v306_v63 = vadd.f32 %v1897_v10, %v305_v40  ;;  %v3258_v40 = vld [vmem:[#allocation19_spill] sm:$0xff] }
  0x81   : > { %693 = vmatpush.msrb.mxu1 %v3254_v5 }
  0x82   : > { %v310_v34 = vsel %vm309_vm2, %v1897_v10, %v306_v63  ;;  %v3260_v63 = vld [vmem:[#allocation17_spill] sm:$0xff] }
  0x83   : > { %695 = vmatpush.msrb.mxu1 %v3255_v22  ;;  %v315_v3 = vsel %vm312_vm3, %v314_v52, %v310_v34  ;;  %v3259_v52 = vand.u32 4294901760, %v3258_v40  ;;  %v3261_v34 = vld [vmem:[#allocation20_spill] sm:$0xff] }
  0x84   : > { %v2708_v24 = vmul.f32 %v315_v3, %v2505_v47  ;;  %v2711_v58 = vmul.f32 %v2549_v12, %v315_v3  ;;  %v2714_v35 = vmul.f32 %v2616_v43, %v315_v3  ;;  %v2717_v1 = vmul.f32 %v2508_v50, %v315_v3 }
  0x85   : > { %v2720_v26 = vmul.f32 %v2530_v38, %v315_v3  ;;  %v2723_v48 = vmul.f32 %v3256_v0, %v315_v3  ;;  %v2726_v4 = vmul.f32 %v2581_v13, %v315_v3  ;;  %v2744_v37 = vmul.f32 %v2566_v30, %v315_v3 }
  0x86   : > { %v326_v47 = vadd.f32 %v2711_v58, %v2708_v24  ;;  %v2747_v36 = vmul.f32 %v2599_v15, %v315_v3  ;;  %v3262_v22 = vand.u32 4294901760, %v3261_v34 }
  0x87   : > { %v329_v12 = vsub.f32 %v2717_v1, %v2720_v26  ;;  %v331_v50 = vsub.f32 %v2723_v48, %v2726_v4 }
  0x88   : > { %v327_v43 = vadd.f32 %v326_v47, %v2714_v35  ;;  %v333_v15 = vsub.f32 %v2744_v37, %v2747_v36 }
  0x89   : > { %v330_v18 = vmul.f32 0.5, %v329_v12  ;;  %v332_v13 = vmul.f32 0.5, %v331_v50  ;;  %v3263_v12 = vld [vmem:[#allocation21_spill] sm:$0xff] }
  0x8a   : > { %v2735_v38 = vmul.f32 0.33333334, %v327_v43  ;;  %v3264_v43 = vand.u32 4294901760, %v3263_v12  ;;  %v334_v50 = vmul.f32 0.5, %v333_v15 }
  0x8b   : > { %v2737_v29 = vand.u32 4294901760, %v330_v18  ;;  %v2752_v42 = vand.u32 4294901760, %v332_v13 }
  0x8c   : > { %v392_v28 = vand.u32 4294901760, %v2735_v38 }
  0x8d   : > { %v2741_v10 = vsub.f32 %v330_v18, %v2737_v29  ;;  %v2767_v47 = vsub.f32 %v332_v13, %v2752_v42  ;;  %v3265_v18 = vld [vmem:[#allocation22_spill] sm:$0xff]  ;;  %v3267_v13 = vld [vmem:[#allocation23_spill] sm:$0xff] }
  0x8e   : > { %v393_v41 = vsub.f32 %v2735_v38, %v392_v28  ;;  %498 = vmatmul.f32.vlgmr.msra.gmra.mxu1 %v392_v28 }
  0x8f   : > { %948 = vmatpush.msra.mxu1 %v3257_v57  ;;  %v751_v7 = vand.u32 4294901760, %v2741_v10 }
  0x90   : > { %v394_v49 = vand.u32 4294901760, %v393_v41  ;;  %552 = vmatmul.f32.vlgmr.msra.gmra.mxu2 %v393_v41 }
  0x91   : > { %1001 = vmatpush.msra.mxu2 %v3259_v52  ;;  %950 = vmatpush.msra.mxu1 %v3260_v63  ;;  %v752_v30 = vsub.f32 %v2741_v10, %v751_v7  ;;  %v2780_v52 = vand.u32 4294901760, %v334_v50 }
  0x92   : > { %v395_v5 = vsub.f32 %v393_v41, %v394_v49  ;;  %591 = vmatmul.f32.vlgmr.msra.gmra.mxu3 %v394_v49  ;;  %v3266_v41 = vand.u32 4294901760, %v3265_v18  ;;  %v3268_v49 = vand.u32 4294901760, %v3267_v13 }
  0x93   : > { %1005 = vmatpush.msra.mxu2 %v3262_v22  ;;  %1076 = vmatpush.msra.mxu3 %v3257_v57  ;;  %v753_v0 = vand.u32 4294901760, %v752_v30  ;;  %v759_v57 = vand.u32 4294901760, %v2767_v47  ;;  %v2795_v30 = vsub.f32 %v334_v50, %v2780_v52 }
  0x94   : > { %v396_v3 = vand.u32 4294901760, %v395_v5  ;;  %952 = vmatpush.msra.mxu1 %v2422_v55 }
  0x95   : > { %1009 = vmatpush.msra.mxu2 %v3264_v43  ;;  %1078 = vmatpush.msra.mxu3 %v3260_v63  ;;  %v767_v5 = vand.u32 4294901760, %v2795_v30 }
  0x96   : > { %397 = vmatmul.f32.vlgmr.msra.gmra.mxu0 %v396_v3  ;;  %697 = vmatmul.f32.vlgmr.msrb.gmra.mxu1 %v392_v28 }
  0x97   : > { %885 = vmatpush.msra.mxu0 %v3258_v40  ;;  %1013 = vmatpush.msra.mxu2 %v3266_v41  ;;  %v3269_v40 = vld [vmem:[#allocation24_spill] sm:$0xff] }
  0x98   : > { %1080 = vmatpush.msra.mxu3 %v2422_v55  ;;  %754 = vmatmul.f32.vlgmr.msrb.gmra.mxu2 %v753_v0  ;;  %v3270_v63 = vand.u32 4294901760, %v3269_v40  ;;  %v760_v55 = vsub.f32 %v2767_v47, %v759_v57 }
  0x99   : > { %888 = vmatpush.msra.mxu0 %v3261_v34  ;;  %1017 = vmatpush.msra.mxu2 %v3268_v49  ;;  %v768_v34 = vsub.f32 %v2795_v30, %v767_v5 }
  0x9a   : > { %1082 = vmatpush.msra.mxu3 %v2429_v59  ;;  %954 = vmatpush.msra.mxu1 %v2429_v59  ;;  %v3271_v59 = vand.u32 4294901760, %v2500_v23  ;;  %v761_v15 = vand.u32 4294901760, %v760_v55 }
  0x9b   : > { %891 = vmatpush.msra.mxu0 %v3263_v12  ;;  %1021 = vmatpush.msra.mxu2 %v3270_v63  ;;  %v1125_v63 = vld [vmem:[#allocation8 + $0x28] sm:$0xff] }
  0x9c   : > { %1084 = vmatpush.msra.mxu3 %v2442_v2  ;;  %956 = vmatpush.msra.mxu1 %v2442_v2  ;;  %v3272_v2 = vand.u32 4294901760, %v2525_v61 }
  0x9d   : > { %894 = vmatpush.msra.mxu0 %v3265_v18  ;;  %871 = vmatmul.f32.vlgmr.msrb.gmra.mxu3 %v2737_v29  ;;  %v1127_v18 = vld [vmem:[#allocation8 + $0x38] sm:$0xff] }
  0x9e   : > { %660 = vmatmul.f32.vlgmr.msrb.gmra.mxu0 %v392_v28  ;;  %1025 = vmatpush.msra.mxu2 %v3271_v59  ;;  %v3273_v28 = vand.u32 4294901760, %v2546_v31 }
  0x9f   : > { %897 = vmatpush.msra.mxu0 %v3267_v13  ;;  %1086 = vmatpush.msra.mxu3 %v2458_v44 }
  0xa0   : > { %1029 = vmatpush.msra.mxu2 %v3272_v2  ;;  %958 = vmatpush.msra.mxu1 %v2458_v44  ;;  %v3274_v44 = vand.u32 4294901760, %v2563_v14 }
  0xa1   : > { %900 = vmatpush.msra.mxu0 %v3269_v40  ;;  %1088 = vmatpush.msra.mxu3 %v2473_v60  ;;  %v1126_v40 = vld [vmem:[#allocation8 + $0x30] sm:$0xff] }
  0xa2   : > { %1033 = vmatpush.msra.mxu2 %v3273_v28  ;;  %960 = vmatpush.msra.mxu1 %v2473_v60  ;;  %v1135_v60 = vld [vmem:[#allocation8 + $0x78] sm:$0xff]  ;;  %v2921_v55 = vand.u32 4294901760, %v1126_v40  ;;  %v1124_v28 = vld [vmem:[#allocation8 + $0x20] sm:$0xff] }
  0xa3   : > { %903 = vmatpush.msra.mxu0 %v2500_v23  ;;  %1090 = vmatpush.msra.mxu3 %v2489_v8  ;;  %v1134_v23 = vld [vmem:[#allocation8 + $0x70] sm:$0xff] }
  0xa4   : > { %762 = vmatmul.f32.gmra.mxu2 %v761_v15  ;;  %962 = vmatpush.msra.mxu1 %v2489_v8  ;;  %v769_v8 = vand.u32 4294901760, %v768_v34  ;;  %v2927_v15 = vand.u32 4294901760, %v1125_v63 }
  0xa5   : > { %906 = vmatpush.msra.mxu0 %v2525_v61  ;;  %1037 = vmatpush.msra.mxu2 %v3274_v44  ;;  %v2828_v61 = vand.u32 4294901760, %v1135_v60  ;;  %v335_v44 = vsub.f32 %v2708_v24, %v2735_v38  ;;  %v2940_v24 = vand.u32 4294901760, %v1124_v28 }
  0xa6   : > { %1092 = vmatpush.msra.mxu3 %v2502_v27  ;;  %964 = vmatpush.msra.mxu1 %v2502_v27  ;;  %v2835_v27 = vand.u32 4294901760, %v1134_v23 }
  0xa7   : > { %909 = vmatpush.msra.mxu0 %v2546_v31  ;;  %875 = vmatmul.f32.gmra.mxu3 %v2752_v42  ;;  %v1133_v31 = vld [vmem:[#allocation8 + $0x68] sm:$0xff] }
  0xa8   : > { %1041 = vmatpush.msra.mxu2 %v836_v39  ;;  %1094 = vmatpush.msra.mxu3 %v2527_v33 }
  0xa9   : > { %912 = vmatpush.msra.mxu0 %v2563_v14  ;;  %966 = vmatpush.msra.mxu1 %v2527_v33  ;;  %v1132_v33 = vld [vmem:[#allocation8 + $0x60] sm:$0xff]  ;;  %v1218_v14 = vsub.f32 %v1135_v60, %v2828_v61 }
  0xaa   : > { %1045 = vmatpush.msra.mxu2 %v842_v6  ;;  %1096 = vmatpush.msra.mxu3 %v2552_v16  ;;  %v2850_v39 = vand.u32 4294901760, %v1132_v33  ;;  %v1131_v6 = vld [vmem:[#allocation8 + $0x58] sm:$0xff] }
  0xab   : > { %915 = vmatpush.msra.mxu0 %v2585_v46  ;;  %968 = vmatpush.msra.mxu1 %v2552_v16  ;;  %v2845_v16 = vand.u32 4294901760, %v1133_v31  ;;  %v1224_v46 = vsub.f32 %v1134_v23, %v2835_v27 }
  0xac   : > { %1049 = vmatpush.msra.mxu2 %v848_v32  ;;  %1098 = vmatpush.msra.mxu3 %v2569_v19  ;;  %v1130_v32 = vld [vmem:[#allocation8 + $0x50] sm:$0xff] }
  0xad   : > { %918 = vmatpush.msra.mxu0 %v2603_v54  ;;  %770 = vmatmul.f32.gmra.mxu2 %v769_v8  ;;  %v2857_v54 = vand.u32 4294901760, %v1218_v14  ;;  %v1123_v8 = vld [vmem:[#allocation8 + $0x18] sm:$0xff] }
  0xae   : > { %1053 = vmatpush.msra.mxu2 %v854_v62  ;;  %1100 = vmatpush.msra.mxu3 %v2587_v20  ;;  %v2870_v62 = vadd.f32 %v2720_v26, %v2717_v1  ;;  %v2882_v1 = vand.u32 4294901760, %v1130_v32  ;;  %v1128_v26 = vld [vmem:[#allocation8 + $0x40] sm:$0xff] }
  0xaf   : > { %921 = vmatpush.msra.mxu0 %v2621_v56  ;;  %879 = vmatmul.f32.gmra.mxu3 %v2780_v52  ;;  %v1230_v56 = vsub.f32 %v1133_v31, %v2845_v16  ;;  %v2898_v50 = vand.u32 4294901760, %v1128_v26  ;;  %v1272_v31 = vsub.f32 %v1126_v40, %v2921_v55 }
  0xb0   : > { %970 = vmatpush.msra.mxu1 %v2569_v19  ;;  %1057 = vmatpush.msra.mxu2 %v860_v17  ;;  %v2865_v19 = vand.u32 4294901760, %v1224_v46  ;;  %v1129_v17 = vld [vmem:[#allocation8 + $0x48] sm:$0xff]  ;;  %v1248_v43 = vsub.f32 %v1130_v32, %v2882_v1  ;;  %v2950_v32 = vand.u32 4294901760, %v1123_v8 }
  0xb1   : > { %924 = vmatpush.msra.mxu0 %v2634_v45  ;;  %1102 = vmatpush.msra.mxu3 %v2605_v25  ;;  %v1236_v45 = vsub.f32 %v1132_v33, %v2850_v39  ;;  %v2891_v3 = vand.u32 4294901760, %v1129_v17 }
  0xb2   : > { %972 = vmatpush.msra.mxu1 %v2587_v20  ;;  %1061 = vmatpush.msra.mxu2 %v866_v21  ;;  %v2873_v20 = vand.u32 4294901760, %v1131_v6  ;;  %v2880_v21 = vand.u32 4294901760, %v1230_v56 }
  0xb3   : > { %927 = vmatpush.msra.mxu0 %v2662_v11  ;;  %1104 = vmatpush.msra.mxu3 %v2641_v9  ;;  %v1220_v11 = vsub.f32 %v1218_v14, %v2857_v54  ;;  %v1254_v49 = vsub.f32 %v1129_v17, %v2891_v3  ;;  %v1121_v17 = vld [vmem:[#allocation8 + $0x8] sm:$0xff] }
  0xb4   : > { %1340 = vmatpush.msrb.mxu2 %v1218_v14  ;;  %974 = vmatpush.msra.mxu1 %v2605_v25  ;;  %v2885_v25 = vand.u32 4294901760, %v1236_v45  ;;  %v1242_v22 = vsub.f32 %v1131_v6, %v2873_v20  ;;  %v1232_v12 = vsub.f32 %v1230_v56, %v2880_v21  ;;  %v1122_v6 = vld [vmem:[#allocation8 + $0x10] sm:$0xff] }
  0xb5   : > { %930 = vmatpush.msra.mxu0 %v2673_v53  ;;  %1106 = vmatpush.msra.mxu3 %v2659_v51  ;;  %v1226_v53 = vsub.f32 %v1224_v46, %v2865_v19  ;;  %v1221_v0 = vand.u32 4294901760, %v1220_v11  ;;  %v2924_v59 = vand.u32 4294901760, %v1254_v49 }
  0xb6   : > { %933 = vmatmul.f32.vlgmr.msra.gmra.mxu0 %v2741_v10  ;;  %1063 = vmatmul.f32.vlgmr.msra.gmra.mxu2 %v2737_v29  ;;  %v1238_v41 = vsub.f32 %v1236_v45, %v2885_v25  ;;  %v2909_v13 = vand.u32 4294901760, %v1242_v22  ;;  %v1260_v10 = vsub.f32 %v1128_v26, %v2898_v50  ;;  %v1284_v26 = vsub.f32 %v1124_v28, %v2940_v24 }
  0xb7   : > { %1137 = vmatpush.msrb.mxu0 %v2828_v61  ;;  %1343 = vmatpush.msrb.mxu2 %v1224_v46  ;;  %v1256_v14 = vsub.f32 %v1254_v49, %v2924_v59  ;;  %v1278_v46 = vsub.f32 %v1125_v63, %v2927_v15 }
  0xb8   : > { %1418 = vmatpush.msrb.mxu3 %v2828_v61  ;;  %976 = vmatpush.msra.mxu1 %v2641_v9  ;;  %v1227_v9 = vand.u32 4294901760, %v1226_v53  ;;  %v1244_v2 = vsub.f32 %v1242_v22, %v2909_v13  ;;  %v2934_v60 = vand.u32 4294901760, %v1260_v10  ;;  %v2958_v53 = vand.u32 4294901760, %v1272_v31 }
  0xb9   : > { %1139 = vmatpush.msrb.mxu0 %v2835_v27  ;;  %1108 = vmatmul.f32.vlgmr.msra.gmra.mxu3 %v2737_v29  ;;  %v2905_v29 = vadd.f32 %v2726_v4, %v2723_v48  ;;  %v1233_v48 = vand.u32 4294901760, %v1232_v12  ;;  %v2917_v4 = vand.u32 4294901760, %v1248_v43  ;;  %v2963_v12 = vand.u32 4294901760, %v1278_v46 }
  0xba   : > { %1346 = vmatpush.msrb.mxu2 %v1230_v56  ;;  %1420 = vmatpush.msrb.mxu3 %v2835_v27  ;;  %v1245_v33 = vand.u32 4294901760, %v1244_v2  ;;  %v2945_v56 = vand.u32 4294901760, %v335_v44  ;;  %v1262_v11 = vsub.f32 %v1260_v10, %v2934_v60  ;;  %v2977_v40 = vand.u32 4294901760, %v1284_v26 }
  0xbb   : > { %1141 = vmatpush.msrb.mxu0 %v2845_v16  ;;  %978 = vmatpush.msra.mxu1 %v2659_v51  ;;  %v2913_v51 = vand.u32 4294901760, %v1127_v18  ;;  %v1250_v23 = vsub.f32 %v1248_v43, %v2917_v4  ;;  %v1274_v63 = vsub.f32 %v1272_v31, %v2958_v53 }
  0xbc   : > { %982 = vmatmul.f32.vlgmr.msra.gmra.mxu1 %v751_v7  ;;  %1349 = vmatpush.msrb.mxu2 %v1236_v45  ;;  %v1239_v7 = vand.u32 4294901760, %v1238_v41  ;;  %v339_v41 = vmul.f32 0.5, %v2870_v62  ;;  %v1280_v62 = vsub.f32 %v1278_v46, %v2963_v12 }
  0xbd   : > { %1143 = vmatpush.msrb.mxu0 %v2850_v39  ;;  %1222 = vmatpush.msrb.mxu1 %v1221_v0  ;;  %v1266_v34 = vsub.f32 %v1127_v18, %v2913_v51  ;;  %v1257_v0 = vand.u32 4294901760, %v1256_v14  ;;  %v2966_v18 = vsub.f32 %v335_v44, %v2945_v56 }
  0xbe   : > { %938 = vmatmul.f32.gmra.mxu0 %v2767_v47  ;;  %1422 = vmatpush.msrb.mxu3 %v2845_v16  ;;  %v1281_v14 = vand.u32 4294901760, %v1280_v62 }
  0xbf   : > { %1145 = vmatpush.msrb.mxu0 %v2873_v20  ;;  %1228 = vmatpush.msrb.mxu1 %v1227_v9  ;;  %v2948_v45 = vand.u32 4294901760, %v1266_v34  ;;  %v2972_v9 = vand.u32 4294901760, %v1121_v17 }
  0xc0   : > { %1352 = vmatpush.msrb.mxu2 %v1242_v22  ;;  %1424 = vmatpush.msrb.mxu3 %v2850_v39  ;;  %v2961_v22 = vand.u32 4294901760, %v1122_v6 }
  0xc1   : > { %1147 = vmatpush.msrb.mxu0 %v2882_v1  ;;  %1067 = vmatmul.f32.gmra.mxu2 %v2752_v42  ;;  %v1268_v47 = vsub.f32 %v1266_v34, %v2948_v45  ;;  %v1302_v44 = vsub.f32 %v1121_v17, %v2972_v9 }
  0xc2   : > { %1234 = vmatpush.msrb.mxu1 %v1233_v48  ;;  %1355 = vmatpush.msrb.mxu2 %v1248_v43  ;;  %v1120_v43 = vld [vmem:[#allocation8] sm:$0xff]  ;;  %v1296_v48 = vsub.f32 %v1122_v6, %v2961_v22 }
  0xc3   : > { %1149 = vmatpush.msrb.mxu0 %v2891_v3  ;;  %1426 = vmatpush.msrb.mxu3 %v2873_v20  ;;  %v1269_v2 = vand.u32 4294901760, %v1268_v47 }
  0xc4   : > { %1112 = vmatmul.f32.gmra.mxu3 %v2752_v42  ;;  %1240 = vmatpush.msrb.mxu1 %v1239_v7  ;;  %v1251_v42 = vand.u32 4294901760, %v1250_v23  ;;  %v1170_v7 = vand.u32 4294901760, %v2966_v18  ;;  %v1275_v23 = vand.u32 4294901760, %v1274_v63 }
  0xc5   : > { %1151 = vmatpush.msrb.mxu0 %v2898_v50  ;;  %1358 = vmatpush.msrb.mxu2 %v1254_v49  ;;  %v1263_v49 = vand.u32 4294901760, %v1262_v11  ;;  %v341_v11 = vmul.f32 0.5, %v2905_v29 }
  0xc6   : > { %1428 = vmatpush.msrb.mxu3 %v2882_v1  ;;  %943 = vmatmul.f32.gmra.mxu0 %v2795_v30  ;;  %v1171_v6 = vsub.f32 %v2966_v18, %v1170_v7 }
  0xc7   : > { %988 = vmatmul.f32.gmra.mxu1 %v759_v57  ;;  %1153 = vmatpush.msrb.mxu0 %v2913_v51  ;;  %v1290_v57 = vsub.f32 %v1123_v8, %v2950_v32  ;;  %v2994_v8 = vand.u32 4294901760, %v1296_v48  ;;  %v3016_v47 = vand.u32 4294901760, %v341_v11 }
  0xc8   : > { %1246 = vmatpush.msrb.mxu1 %v1245_v33  ;;  %1361 = vmatpush.msrb.mxu2 %v1260_v10  ;;  %v2981_v10 = vand.u32 4294901760, %v1120_v43 }
  0xc9   : > { %1430 = vmatpush.msrb.mxu3 %v2891_v3  ;;  %1155 = vmatpush.msrb.mxu0 %v2921_v55  ;;  %v2987_v28 = vand.u32 4294901760, %v1290_v57  ;;  %v1298_v17 = vsub.f32 %v1296_v48, %v2994_v8  ;;  %v1185_v62 = vsub.f32 %v341_v11, %v3016_v47 }
  0xca   : > { %1252 = vmatpush.msrb.mxu1 %v1251_v42  ;;  %1364 = vmatpush.msrb.mxu2 %v1266_v34  ;;  %v2990_v34 = vand.u32 4294901760, %v339_v41  ;;  %v1308_v33 = vsub.f32 %v1120_v43, %v2981_v10 }
  0xcb   : > { %1432 = vmatpush.msrb.mxu3 %v2898_v50  ;;  %1071 = vmatmul.f32.gmra.mxu2 %v2780_v52 }
  0xcc   : > { %1157 = vmatpush.msrb.mxu0 %v2927_v15  ;;  %1258 = vmatpush.msrb.mxu1 %v1257_v0  ;;  %v1177_v42 = vsub.f32 %v339_v41, %v2990_v34  ;;  %v1172_v0 = vand.u32 4294901760, %v1171_v6  ;;  %v1299_v41 = vand.u32 4294901760, %v1298_v17 }
  0xcd   : > { %1367 = vmatpush.msrb.mxu2 %v1272_v31  ;;  %1434 = vmatpush.msrb.mxu3 %v2913_v51  ;;  %v1286_v31 = vsub.f32 %v1284_v26, %v2977_v40 }
  0xce   : > { %1116 = vmatmul.f32.gmra.mxu3 %v2780_v52  ;;  %1159 = vmatpush.msrb.mxu0 %v2940_v24  ;;  %v3003_v52 = vand.u32 4294901760, %v1302_v44 }
  0xcf   : > { %1264 = vmatpush.msrb.mxu1 %v1263_v49  ;;  %1370 = vmatpush.msrb.mxu2 %v1278_v46  ;;  %v1292_v46 = vsub.f32 %v1290_v57, %v2987_v28  ;;  %v1287_v30 = vand.u32 4294901760, %v1286_v31 }
  0xd0   : > { %1436 = vmatpush.msrb.mxu3 %v2921_v55  ;;  %994 = vmatmul.f32.gmra.mxu1 %v767_v5  ;;  %v3010_v5 = vand.u32 4294901760, %v1308_v33  ;;  %v1304_v29 = vsub.f32 %v1302_v44, %v3003_v52 }
  0xd1   : > { %1161 = vmatpush.msrb.mxu0 %v2950_v32  ;;  %1270 = vmatpush.msrb.mxu1 %v1269_v2  ;;  %v1293_v43 = vand.u32 4294901760, %v1292_v46 }
  0xd2   : > { %1373 = vmatpush.msrb.mxu2 %v1284_v26  ;;  %1438 = vmatpush.msrb.mxu3 %v2927_v15  ;;  %v1178_v26 = vand.u32 4294901760, %v1177_v42  ;;  %v1305_v49 = vand.u32 4294901760, %v1304_v29 }
  0xd3   : > { %1163 = vmatpush.msrb.mxu0 %v2961_v22  ;;  %1276 = vmatpush.msrb.mxu1 %v1275_v23  ;;  %v1186_v23 = vand.u32 4294901760, %v1185_v62 }
  0xd4   : > { %1376 = vmatpush.msrb.mxu2 %v1290_v57  ;;  %1440 = vmatpush.msrb.mxu3 %v2940_v24  ;;  %v1310_v57 = vsub.f32 %v1308_v33, %v3010_v5  ;;  %v1179_v63 = vsub.f32 %v1177_v42, %v1178_v26 }
  0xd5   : > { %1165 = vmatpush.msrb.mxu0 %v2972_v9  ;;  %1282 = vmatpush.msrb.mxu1 %v1281_v14 }
  0xd6   : > { %1379 = vmatpush.msrb.mxu2 %v1296_v48  ;;  %1442 = vmatpush.msrb.mxu3 %v2950_v32  ;;  %v336_v48 = vsub.f32 %v2711_v58, %v2735_v38  ;;  %v1311_v2 = vand.u32 4294901760, %v1310_v57  ;;  %v342_v58 = vadd.f32 %v2747_v36, %v2744_v37 }
  0xd7   : > { %1167 = vmatpush.msrb.mxu0 %v2981_v10  ;;  %1288 = vmatpush.msrb.mxu1 %v1287_v30 }
  0xd8   : > { %1382 = vmatpush.msrb.mxu2 %v1302_v44  ;;  %1444 = vmatpush.msrb.mxu3 %v2961_v22  ;;  %v1180_v44 = vand.u32 4294901760, %v1179_v63  ;;  %v3029_v31 = vand.u32 4294901760, %v336_v48 }
  0xd9   : > { %1173 = vmatmul.f32.vlgmr.msrb.gmra.mxu0 %v1172_v0  ;;  %1294 = vmatpush.msrb.mxu1 %v1293_v43 }
  0xda   : > { %1385 = vmatpush.msrb.mxu2 %v1308_v33  ;;  %1446 = vmatpush.msrb.mxu3 %v2972_v9  ;;  %v343_v33 = vmul.f32 0.5, %v342_v58 }
  0xdb   : > { %1388 = vmatmul.f32.vlgmr.msrb.gmra.mxu2 %v2966_v18  ;;  %1300 = vmatpush.msrb.mxu1 %v1299_v41  ;;  %v1187_v18 = vsub.f32 %v1185_v62, %v1186_v23 }
  0xdc   : > { %1780 = vmatpush.msra.mxu2 %v2857_v54  ;;  %1448 = vmatpush.msrb.mxu3 %v2981_v10 }
  0xdd   : > { %1452 = vmatmul.f32.vlgmr.msrb.gmra.mxu3 %v1170_v7  ;;  %1306 = vmatpush.msrb.mxu1 %v1305_v49  ;;  %v1193_v7 = vsub.f32 %v336_v48, %v3029_v31  ;;  %v1188_v37 = vand.u32 4294901760, %v1187_v18 }
  0xde   : > { %1796 = vmatpush.msra.mxu3 %v2828_v61  ;;  %1781 = vmatpush.msra.mxu2 %v2865_v19 }
  0xdf   : > { %1312 = vmatpush.msrb.mxu1 %v1311_v2  ;;  %1489 = vmatpush.msra.mxu0 %v2857_v54  ;;  %v1194_v36 = vand.u32 4294901760, %v1193_v7  ;;  %v3046_v54 = vand.u32 4294901760, %v343_v33 }
  0xe0   : > { %1797 = vmatpush.msra.mxu3 %v2835_v27  ;;  %1314 = vmatmul.f32.vlgmr.msrb.gmra.mxu1 %v2945_v56 }
  0xe1   : > { %1181 = vmatmul.f32.gmra.mxu0 %v1180_v44  ;;  %1782 = vmatpush.msra.mxu2 %v2880_v21 }
  0xe2   : > { %1576 = vmatpush.msra.mxu1 %v2828_v61  ;;  %1798 = vmatpush.msra.mxu3 %v2845_v16  ;;  %v1195_v61 = vsub.f32 %v1193_v7, %v1194_v36 }
  0xe3   : > { %1393 = vmatmul.f32.gmra.mxu2 %v1177_v42  ;;  %1493 = vmatpush.msra.mxu0 %v2865_v19  ;;  %v337_v19 = vsub.f32 %v2714_v35, %v2735_v38 }
  0xe4   : > { %1783 = vmatpush.msra.mxu2 %v2885_v25  ;;  %1578 = vmatpush.msra.mxu1 %v2835_v27  ;;  %v1201_v27 = vsub.f32 %v343_v33, %v3046_v54 }
  0xe5   : > { %1458 = vmatmul.f32.gmra.mxu3 %v1178_v26  ;;  %1497 = vmatpush.msra.mxu0 %v2880_v21 }
  0xe6   : > { %1799 = vmatpush.msra.mxu3 %v2850_v39  ;;  %1784 = vmatpush.msra.mxu2 %v2909_v13  ;;  %v1202_v21 = vand.u32 4294901760, %v1201_v27 }
  0xe7   : > { %1580 = vmatpush.msra.mxu1 %v2845_v16  ;;  %1501 = vmatpush.msra.mxu0 %v2885_v25  ;;  %v1196_v16 = vand.u32 4294901760, %v1195_v61  ;;  %v3064_v25 = vand.u32 4294901760, %v337_v19 }
  0xe8   : > { %1318 = vmatmul.f32.gmra.mxu1 %v2990_v34  ;;  %1800 = vmatpush.msra.mxu3 %v2873_v20  ;;  %v1203_v35 = vsub.f32 %v1201_v27, %v1202_v21 }
  0xe9   : > { %1189 = vmatmul.f32.gmra.mxu0 %v1188_v37  ;;  %1785 = vmatpush.msra.mxu2 %v2917_v4  ;;  %v1209_v38 = vsub.f32 %v337_v19, %v3064_v25 }
  0xea   : > { %1582 = vmatpush.msra.mxu1 %v2850_v39  ;;  %1801 = vmatpush.msra.mxu3 %v2882_v1  ;;  %v1204_v39 = vand.u32 4294901760, %v1203_v35 }
  0xeb   : > { %1398 = vmatmul.f32.gmra.mxu2 %v1185_v62  ;;  %1505 = vmatpush.msra.mxu0 %v2909_v13 }
  0xec   : > { %1786 = vmatpush.msra.mxu2 %v2924_v59  ;;  %1584 = vmatpush.msra.mxu1 %v2873_v20  ;;  %v1210_v20 = vand.u32 4294901760, %v1209_v38 }
  0xed   : > { %1464 = vmatmul.f32.gmra.mxu3 %v1186_v23  ;;  %1509 = vmatpush.msra.mxu0 %v2917_v4 }
  0xee   : > { %1802 = vmatpush.msra.mxu3 %v2891_v3  ;;  %1787 = vmatpush.msra.mxu2 %v2934_v60 }
  0xef   : > { %1586 = vmatpush.msra.mxu1 %v2882_v1  ;;  %1513 = vmatpush.msra.mxu0 %v2924_v59  ;;  %v1211_v1 = vsub.f32 %v1209_v38, %v1210_v20 }
  0xf0   : > { %1322 = vmatmul.f32.gmra.mxu1 %v3016_v47  ;;  %1803 = vmatpush.msra.mxu3 %v2898_v50 }
  0xf1   : > { %1197 = vmatmul.f32.gmra.mxu0 %v1196_v16  ;;  %1788 = vmatpush.msra.mxu2 %v2948_v45 }
  0xf2   : > { %1588 = vmatpush.msra.mxu1 %v2891_v3  ;;  %1804 = vmatpush.msra.mxu3 %v2913_v51  ;;  %v1212_v3 = vand.u32 4294901760, %v1211_v1 }
  0xf3   : > { %1403 = vmatmul.f32.gmra.mxu2 %v1193_v7  ;;  %1517 = vmatpush.msra.mxu0 %v2934_v60 }
  0xf4   : > { %1789 = vmatpush.msra.mxu2 %v2958_v53  ;;  %1590 = vmatpush.msra.mxu1 %v2898_v50 }
  0xf5   : > { %1470 = vmatmul.f32.gmra.mxu3 %v1194_v36  ;;  %1521 = vmatpush.msra.mxu0 %v2948_v45 }
  0xf6   : > { %1805 = vmatpush.msra.mxu3 %v2921_v55  ;;  %1790 = vmatpush.msra.mxu2 %v2963_v12 }
  0xf7   : > { %1592 = vmatpush.msra.mxu1 %v2913_v51  ;;  %1525 = vmatpush.msra.mxu0 %v2958_v53 }
  0xf8   : > { %1326 = vmatmul.f32.gmra.mxu1 %v3029_v31  ;;  %1806 = vmatpush.msra.mxu3 %v2927_v15 }
  0xf9   : > { %1205 = vmatmul.f32.gmra.mxu0 %v1204_v39  ;;  %1791 = vmatpush.msra.mxu2 %v2977_v40 }
  0xfa   : > { %1529 = vmatpush.msra.mxu0 %v2963_v12  ;;  %1594 = vmatpush.msra.mxu1 %v2921_v55 }
  0xfb   : > { %1408 = vmatmul.f32.gmra.mxu2 %v1201_v27  ;;  %1807 = vmatpush.msra.mxu3 %v2940_v24 }
  0xfc   : > { %1792 = vmatpush.msra.mxu2 %v2987_v28  ;;  %1533 = vmatpush.msra.mxu0 %v2977_v40 }
  0xfd   : > { %1476 = vmatmul.f32.gmra.mxu3 %v1202_v21  ;;  %1596 = vmatpush.msra.mxu1 %v2927_v15 }
  0xfe   : > { %1808 = vmatpush.msra.mxu3 %v2950_v32  ;;  %1537 = vmatpush.msra.mxu0 %v2987_v28 }
  0xff   : > { %1793 = vmatpush.msra.mxu2 %v2994_v8  ;;  %1598 = vmatpush.msra.mxu1 %v2940_v24 }
 0x100   : > { %1330 = vmatmul.f32.gmra.mxu1 %v3046_v54  ;;  %1541 = vmatpush.msra.mxu0 %v2994_v8 }
 0x101   : > { %1213 = vmatmul.f32.gmra.mxu0 %v1212_v3  ;;  %1809 = vmatpush.msra.mxu3 %v2961_v22 }
 0x102   : > { %1794 = vmatpush.msra.mxu2 %v3003_v52  ;;  %1545 = vmatpush.msra.mxu0 %v3003_v52 }
 0x103   : > { %1413 = vmatmul.f32.gmra.mxu2 %v1209_v38  ;;  %1600 = vmatpush.msra.mxu1 %v2950_v32 }
 0x104   : > { %1810 = vmatpush.msra.mxu3 %v2972_v9  ;;  %1549 = vmatpush.msra.mxu0 %v3010_v5 }
 0x105   : > { %1482 = vmatmul.f32.gmra.mxu3 %v1210_v20  ;;  %1795 = vmatpush.msra.mxu2 %v3010_v5 }
 0x106   : > { %1602 = vmatpush.msra.mxu1 %v2961_v22  ;;  %1811 = vmatpush.msra.mxu3 %v2981_v10 }
 0x108   : > { %1334 = vmatmul.f32.gmra.mxu1 %v3064_v25 }
 0x109   : > { %1551 = vmatmul.f32.vlgmr.msra.gmra.mxu0 %v2945_v56  ;;  %1604 = vmatpush.msra.mxu1 %v2972_v9 }
 0x10b   : > { %1563 = vmatmul.f32.vlgmr.msra.gmra.mxu2 %v3029_v31  ;;  %1606 = vmatpush.msra.mxu1 %v2981_v10  ;;  %v499_v50 = vpop.f32.mrf.mxu1 }
 0x10d   : > { %1620 = vmatmul.f32.vlgmr.msra.gmra.mxu3 %v3029_v31 }
 0x110   : > { %1608 = vmatmul.f32.vlgmr.msra.gmra.mxu1 %v2945_v56 }
 0x111   : > { %1555 = vmatmul.f32.gmra.mxu0 %v2990_v34 }
 0x113   : > { %1567 = vmatmul.f32.gmra.mxu2 %v3046_v54  ;;  %v398_v13 = vpop.f32.mrf.mxu0  ;;  %v553_v51 = vpop.f32.mrf.mxu2 }
 0x114   : > { %v500_v4 = vadd.f32 %v499_v50, %v398_v13  ;;  %v698_v24 = vpop.f32.mrf.mxu1 }
 0x115   : > { %1624 = vmatmul.f32.gmra.mxu3 %v3046_v54  ;;  %v592_v55 = vpop.f32.mrf.mxu3 }
 0x116   : > { %v554_v59 = vadd.f32 %v553_v51, %v500_v4 }
 0x118   : > { %1612 = vmatmul.f32.gmra.mxu1 %v2990_v34  ;;  %v593_v15 = vadd.f32 %v592_v55, %v554_v59 }
 0x119   : > { %1559 = vmatmul.f32.gmra.mxu0 %v3016_v47 }
 0x11b   : > { %1571 = vmatmul.f32.gmra.mxu2 %v3064_v25  ;;  %v661_v60 = vpop.f32.mrf.mxu0  ;;  %v755_v45 = vpop.f32.mrf.mxu2 }
 0x11c   : > { %v662_v56 = vadd.f32 %v661_v60, %v593_v15 }
 0x11d   : > { %1628 = vmatmul.f32.gmra.mxu3 %v3064_v25 }
 0x11e   : > { %v699_v32 = vadd.f32 %v698_v24, %v662_v56 }
 0x120   : > { %1616 = vmatmul.f32.gmra.mxu1 %v3016_v47  ;;  %1632 = vst [vmem:[%s3124_s26] sm:$0xff] %v699_v32  ;;  %v872_v53 = vpop.f32.mrf.mxu3 }
 0x121   : > { %v873_v28 = vadd.f32 %v872_v53, %v755_v45 }
 0x127   : > { %v763_v22 = vpop.f32.mrf.mxu2 }
 0x12a   : > { %v876_v12 = vpop.f32.mrf.mxu3 }
 0x12b   : > { %v877_v30 = vadd.f32 %v876_v12, %v763_v22 }
 0x130   : > { %v771_v9 = vpop.f32.mrf.mxu2 }
 0x132   : > { %v880_v40 = vpop.f32.mrf.mxu3 }
 0x133   : > { %v934_v10 = vpop.f32.mrf.mxu0  ;;  %v881_v57 = vadd.f32 %v880_v40, %v771_v9 }
 0x134   : > { %v935_v34 = vadd.f32 %v934_v10, %v873_v28 }
 0x139   : > { %v983_v8 = vpop.f32.mrf.mxu1  ;;  %v1064_v14 = vpop.f32.mrf.mxu2 }
 0x13a   : > { %v984_v6 = vadd.f32 %v983_v8, %v935_v34 }
 0x13b   : > { %v939_v11 = vpop.f32.mrf.mxu0 }
 0x13c   : > { %v1065_v52 = vadd.f32 %v1064_v14, %v984_v6  ;;  %v1109_v46 = vpop.f32.mrf.mxu3  ;;  %v940_v5 = vadd.f32 %v939_v11, %v877_v30 }
 0x13e   : > { %v1110_v42 = vadd.f32 %v1109_v46, %v1065_v52 }
 0x140   : > { %1633 = vst [vmem:[%s3124_s26 + $0x8] sm:$0xff] %v1110_v42 }
 0x143   : > { %v944_v47 = vpop.f32.mrf.mxu0 }
 0x144   : > { %v989_v17 = vpop.f32.mrf.mxu1  ;;  %v1068_v0 = vpop.f32.mrf.mxu2  ;;  %v945_v49 = vadd.f32 %v944_v47, %v881_v57 }
 0x145   : > { %v990_v43 = vadd.f32 %v989_v17, %v940_v5 }
 0x147   : > { %v1069_v29 = vadd.f32 %v1068_v0, %v990_v43  ;;  %v1113_v26 = vpop.f32.mrf.mxu3 }
 0x149   : > { %v1114_v41 = vadd.f32 %v1113_v26, %v1069_v29 }
 0x14b   : > { %1634 = vst [vmem:[%s3124_s26 + $0x10] sm:$0xff] %v1114_v41 }
 0x14d   : > { %v995_v63 = vpop.f32.mrf.mxu1 }
 0x14e   : > { %v996_v62 = vadd.f32 %v995_v63, %v945_v49  ;;  %v1072_v48 = vpop.f32.mrf.mxu2 }
 0x150   : > { %v1073_v2 = vadd.f32 %v1072_v48, %v996_v62 }
 0x151   : > { %v1117_v44 = vpop.f32.mrf.mxu3 }
 0x152   : > { %v1118_v23 = vadd.f32 %v1117_v44, %v1073_v2 }
 0x154   : > { %1635 = vst [vmem:[%s3124_s26 + $0x18] sm:$0xff] %v1118_v23 }
 0x156   : > { %v1174_v31 = vpop.f32.mrf.mxu0 }
 0x15d   : > { %v1315_v58 = vpop.f32.mrf.mxu1 }
 0x15e   : > { %v1182_v18 = vpop.f32.mrf.mxu0  ;;  %v1389_v7 = vpop.f32.mrf.mxu2  ;;  %v1316_v13 = vadd.f32 %v1315_v58, %v1174_v31 }
 0x160   : > { %v1453_v33 = vpop.f32.mrf.mxu3  ;;  %v1390_v55 = vadd.f32 %v1389_v7, %v1316_v13 }
 0x162   : > { %v1454_v56 = vadd.f32 %v1453_v33, %v1390_v55 }
 0x165   : > { %v1319_v37 = vpop.f32.mrf.mxu1 }
 0x166   : > { %v1190_v36 = vpop.f32.mrf.mxu0  ;;  %v1394_v54 = vpop.f32.mrf.mxu2  ;;  %v1320_v45 = vadd.f32 %v1319_v37, %v1182_v18 }
 0x168   : > { %v1459_v61 = vpop.f32.mrf.mxu3  ;;  %v1395_v9 = vadd.f32 %v1394_v54, %v1320_v45 }
 0x16a   : > { %v1460_v52 = vadd.f32 %v1459_v61, %v1395_v9 }
 0x16d   : > { %v1323_v27 = vpop.f32.mrf.mxu1 }
 0x16e   : > { %v1198_v19 = vpop.f32.mrf.mxu0  ;;  %v1399_v16 = vpop.f32.mrf.mxu2  ;;  %v1324_v46 = vadd.f32 %v1323_v27, %v1190_v36 }
 0x170   : > { %v1465_v21 = vpop.f32.mrf.mxu3  ;;  %v1400_v17 = vadd.f32 %v1399_v16, %v1324_v46 }
 0x172   : > { %v1466_v49 = vadd.f32 %v1465_v21, %v1400_v17 }
 0x175   : > { %v1327_v25 = vpop.f32.mrf.mxu1 }
 0x176   : > { %v1206_v35 = vpop.f32.mrf.mxu0  ;;  %v1404_v38 = vpop.f32.mrf.mxu2  ;;  %v1328_v51 = vadd.f32 %v1327_v25, %v1198_v19 }
 0x178   : > { %v1471_v39 = vpop.f32.mrf.mxu3  ;;  %v1405_v24 = vadd.f32 %v1404_v38, %v1328_v51 }
 0x17a   : > { %v1472_v53 = vadd.f32 %v1471_v39, %v1405_v24 }
 0x17d   : > { %v1331_v20 = vpop.f32.mrf.mxu1 }
 0x17e   : > { %v1214_v1 = vpop.f32.mrf.mxu0  ;;  %v1409_v3 = vpop.f32.mrf.mxu2  ;;  %v1332_v22 = vadd.f32 %v1331_v20, %v1206_v35 }
 0x180   : > { %v1477_v50 = vpop.f32.mrf.mxu3  ;;  %v1410_v14 = vadd.f32 %v1409_v3, %v1332_v22 }
 0x182   : > { %v1478_v11 = vadd.f32 %v1477_v50, %v1410_v14 }
 0x185   : > { %v1335_v4 = vpop.f32.mrf.mxu1 }
 0x186   : > { %v1414_v59 = vpop.f32.mrf.mxu2  ;;  %v1552_v15 = vpop.f32.mrf.mxu0  ;;  %v1336_v30 = vadd.f32 %v1335_v4, %v1214_v1 }
 0x187   : > { %v1553_v32 = vadd.f32 %v1552_v15, %v1454_v56 }
 0x188   : > { %v1483_v60 = vpop.f32.mrf.mxu3  ;;  %v1415_v47 = vadd.f32 %v1414_v59, %v1336_v30 }
 0x18a   : > { %v1484_v62 = vadd.f32 %v1483_v60, %v1415_v47 }
 0x18d   : > { %v1609_v12 = vpop.f32.mrf.mxu1 }
 0x18e   : > { %v1564_v40 = vpop.f32.mrf.mxu2  ;;  %v1610_v10 = vadd.f32 %v1609_v12, %v1553_v32  ;;  %v1556_v28 = vpop.f32.mrf.mxu0 }
 0x18f   : > { %v1565_v34 = vadd.f32 %v1564_v40, %v1472_v53  ;;  %v1557_v42 = vadd.f32 %v1556_v28, %v1460_v52 }
 0x190   : > { %1636 = vst [vmem:[%s3124_s26 + $0x20] sm:$0xff] %v1610_v10  ;;  %v1621_v8 = vpop.f32.mrf.mxu3 }
 0x191   : > { %v1622_v6 = vadd.f32 %v1621_v8, %v1565_v34 }
 0x193   : > { %1639 = vst [vmem:[%s3124_s26 + $0x38] sm:$0xff] %v1622_v6 }
 0x195   : > { %v1613_v5 = vpop.f32.mrf.mxu1 }
 0x196   : > { %v1568_v0 = vpop.f32.mrf.mxu2  ;;  %v1614_v43 = vadd.f32 %v1613_v5, %v1557_v42  ;;  %v1560_v41 = vpop.f32.mrf.mxu0 }
 0x197   : > { %v1569_v29 = vadd.f32 %v1568_v0, %v1478_v11  ;;  %v1561_v63 = vadd.f32 %v1560_v41, %v1466_v49 }
 0x198   : > { %1637 = vst [vmem:[%s3124_s26 + $0x28] sm:$0xff] %v1614_v43  ;;  %v1625_v26 = vpop.f32.mrf.mxu3 }
 0x199   : > { %v1626_v57 = vadd.f32 %v1625_v26, %v1569_v29 }
 0x19b   : > { %1640 = vst [vmem:[%s3124_s26 + $0x40] sm:$0xff] %v1626_v57 }
 0x19d   : > { %v1617_v48 = vpop.f32.mrf.mxu1 }
 0x19e   : > { %v1572_v2 = vpop.f32.mrf.mxu2  ;;  %v1618_v44 = vadd.f32 %v1617_v48, %v1561_v63 }
 0x19f   : > { %v1573_v23 = vadd.f32 %v1572_v2, %v1484_v62 }
 0x1a0   : > { %1638 = vst [vmem:[%s3124_s26 + $0x30] sm:$0xff] %v1618_v44  ;;  %v1629_v31 = vpop.f32.mrf.mxu3 }
 0x1a1   : > { %v1630_v58 = vadd.f32 %v1629_v31, %v1573_v23 }
 0x1a3   : > { %1641 = vst [vmem:[%s3124_s26 + $0x48] sm:$0xff] %v1630_v58 }
 0x1a4   : > { %2045 = shalt.err (!%p2042_p10)
}
 0x1a5   : > { %1830 = dma.vmem_to_hbm [thread:$0]  (%p2216_p5), %s1657_s19, 1280, %s1659_s25, %s1643_s30  }
 0x1a6 PF: > { %p1857_p11 = scmp.ge.s32.totalorder %s2092_s18, 2  ;;  %s1670_s13 = sand.u32 1, %s2080_s15  }
 0x1a7   : > { %s1671_s24 = scalar_lea.sflag [#allocation4], %s1670_s13 }
 0x1a8   : > { %p1847_p12 = pnand %p1857_p11, %p2160_p6 }
 0x1aa   : > { %p1848_p13 = pneg %p1847_p12 }
 0x1ac   : > { %2075 = dma.done.wait (%p1848_p13), %s1671_s24, 1280  }
 0x1ad   : > { %2077 = vsyncadd (%p1848_p13), %s1671_s24, 4294966016  ;;  %p19_p0 = scmp.ge.s32.totalorder %s2197_s23, 5   ;;  %s3275_s15 = smov %s2084_s16 }
 0x1ae   : > { %s3276_s16 = smov %s2088_s17  ;;  %s3277_s17 = smov %s2212_s27 }
 0x1af   : > { %s3278_s18 = smov %s2197_s23  ;;  %21 = sbr.rel (!%p19_p0) target bundleno = 7 (0x7), region = 101 }
 0x1b4   :  { %1677 = vsyncpa [#allocation3], 1 }
 0x1b5   :  { %1679 = vsyncpa [#allocation3 + $0x1], 1 }
 0x1b6   :  { %1680 = vsyncpa [#allocation6], 1 }
 0x1b7   :  { %1681 = vsyncpa [#allocation9], 1 }
 0x1b8   :  { %1682 = vsyncpa [#allocation4], 1 }
 0x1b9   :  { %1684 = vsyncpa [#allocation4 + $0x1], 1 }

</bundles_post_ra>
